<compile_context>
chip_gen: v5e
topology: v5e:2x2
jax: 0.10.0
libtpu: 0.0.40
codegen_flags: <defaults>
</compile_context>

<pallas_src>
import functools
import math

import jax
import jax.numpy as jnp
from jax.experimental import pallas as pl
from jax.experimental.pallas import tpu as pltpu


# ----------------------------------------------------------------------------
# Hardware-aware knobs
# ----------------------------------------------------------------------------
@functools.lru_cache(maxsize=None)
def _vmem_capacity_bytes():
    try:
        return int(pltpu.get_tpu_info().vmem_capacity_bytes)
    except Exception:
        return 128 * 1024 * 1024


def _vmem_limit_bytes():
    # Leave more than half of physical VMEM for pipeline I/O buffers and
    # compiler-internal scratch: ~45 MiB on v5e/v6e (128 MiB), ~28 MiB on v7x.
    return min(45 * 1024 * 1024, int(_vmem_capacity_bytes() * 0.45))


def _s_tile_default(S, dtype):
    """Sequence tile: divisor of S, multiple of the sublane pack (16 for
    sub-32-bit dtypes), sized for the generation's VMEM budget."""
    target = 512 if _vmem_capacity_bytes() >= 96 * 1024 * 1024 else 256
    if S <= target:
        return S
    sub = 16 if jnp.dtype(dtype).itemsize < 4 else 8
    for t in range(target, sub - 1, -1):
        if S % t == 0 and t % sub == 0:
            return t
    for t in range(target, 7, -1):
        if S % t == 0 and t % 8 == 0:
            return t
    # TODO(synk): pl.cdiv grid + masked tail instead of whole-sequence fallback.
    return S


def _inner_chunk_default(inner):
    """FF inner-dim chunk: divisor of `inner`, multiple of 128, <= 2048."""
    target = 2048
    if inner <= target:
        return inner
    for t in range(target, 127, -128):
        if inner % t == 0:
            return t
    return inner


def _spec(shape, index_map=None, *, single=False):
    """BlockSpec helper. `single=True` -> one VMEM buffer (grid-invariant or
    single-chunk operands); otherwise default double-buffering."""
    if index_map is None:
        index_map = lambda *_: (0,) * len(shape)
    if single:
        return pl.BlockSpec(shape, index_map, pipeline_mode=pl.Buffered(1))
    return pl.BlockSpec(shape, index_map)


# ----------------------------------------------------------------------------
# In-kernel helpers
# ----------------------------------------------------------------------------
def _layernorm(x_f32, g_f32, b_f32, eps):
    mean = jnp.mean(x_f32, axis=-1, keepdims=True)
    var = jnp.mean(jnp.square(x_f32 - mean), axis=-1, keepdims=True)
    return (x_f32 - mean) * jax.lax.rsqrt(var + eps) * g_f32 + b_f32


def _mha_into(q, k, v, o_scr, heads, hd):
    """Multi-head attention; softmax scale pre-folded into Wq.

    q: (S_t, D), k/v: (S_kv, D) in the compute dtype.  Each head's output is
    stored into its column slice of the (S_t, D) f32 scratch (no concat
    relayout); caller does one (S_t, D) @ (D, D) out-projection from it.
    """
    dn = (((1,), (1,)), ((), ()))  # contract head-dim axes (q @ k^T)
    for h in range(heads):
        sl = slice(h * hd, (h + 1) * hd)
        s = jax.lax.dot_general(q[:, sl], k[:, sl], dn,
                                preferred_element_type=jnp.float32)
        s = s - jnp.max(s, axis=-1, keepdims=True)
        p = jnp.exp(s)
        p = p * pl.reciprocal(jnp.sum(p, axis=-1, keepdims=True), approx=True)
        o_scr[:, sl] = jnp.dot(p.astype(v.dtype), v[:, sl],
                               preferred_element_type=jnp.float32)
    # TODO(synk): head-major (heads, S, hd) K/V layout (v6e/v7x) and per-head
    # out-proj accumulate (v5e) to avoid lane slices at non-128-aligned h*hd.


# ----------------------------------------------------------------------------
# Pallas kernels
# ----------------------------------------------------------------------------
def self_attn_kernel(xt_ref, xf_ref, g_ref, b_ref, wq_ref, wk_ref, wv_ref,
                     wo_ref, o_ref, k_scr, v_scr, o_scr, *, heads, eps):
    """Fused: LayerNorm(hidden) -> self-attention -> out-projection."""
    D = wq_ref.shape[0]
    hd = D // heads
    cdt = wq_ref.dtype
    g = g_ref[0].astype(jnp.float32)
    b = b_ref[0].astype(jnp.float32)

    # K/V of the full sequence: computed once per (batch, core-split) chunk
    # (si == 0), cached in VMEM scratch, reused by all query tiles of the
    # chunk.  Relies on the si axis being sequential ("arbitrary").
    @pl.when(pl.program_id(2) == 0)
    def _():
        nf = _layernorm(xf_ref[0].astype(jnp.float32), g, b, eps).astype(cdt)
        k_scr[...] = jnp.dot(nf, wk_ref[...],
                             preferred_element_type=jnp.float32).astype(k_scr.dtype)
        v_scr[...] = jnp.dot(nf, wv_ref[...],
                             preferred_element_type=jnp.float32).astype(v_scr.dtype)

    n = _layernorm(xt_ref[0].astype(jnp.float32), g, b, eps)
    q = jnp.dot(n.astype(cdt), wq_ref[...],       # softmax scale folded into Wq
                preferred_element_type=jnp.float32).astype(cdt)
    _mha_into(q, k_scr[...], v_scr[...], o_scr, heads, hd)
    o_ref[0] = jnp.dot(o_scr[...].astype(cdt), wo_ref[...],
                       preferred_element_type=jnp.float32).astype(o_ref.dtype)


def cross_attn_kernel(a1_ref, ab1_ref, r_ref, ab2_ref, g_ref, b_ref, ctx_ref,
                      wq_ref, wk_ref, wv_ref, wo_ref, pre3_ref,
                      k_scr, v_scr, o_scr, *, heads, eps):
    """Fused: pre2 = a1 + attn1_bias + hidden ; LN(pre2) -> cross-attention ->
    emits pre3 = a2 + attn2_bias + pre2 (the only tensor the FF kernel needs)."""
    D = wq_ref.shape[0]
    hd = D // heads
    cdt = wq_ref.dtype

    # Context K/V computed once per (batch, core-split) chunk.
    @pl.when(pl.program_id(2) == 0)
    def _():
        c = ctx_ref[0].astype(cdt)
        k_scr[...] = jnp.dot(c, wk_ref[...],
                             preferred_element_type=jnp.float32).astype(k_scr.dtype)
        v_scr[...] = jnp.dot(c, wv_ref[...],
                             preferred_element_type=jnp.float32).astype(v_scr.dtype)

    pre2 = (a1_ref[0].astype(jnp.float32) + ab1_ref[0].astype(jnp.float32)
            + r_ref[0].astype(jnp.float32))
    n = _layernorm(pre2, g_ref[0].astype(jnp.float32),
                   b_ref[0].astype(jnp.float32), eps)
    q = jnp.dot(n.astype(cdt), wq_ref[...],
                preferred_element_type=jnp.float32).astype(cdt)
    _mha_into(q, k_scr[...], v_scr[...], o_scr, heads, hd)
    a2 = jnp.dot(o_scr[...].astype(cdt), wo_ref[...],
                 preferred_element_type=jnp.float32)
    pre3_ref[0] = (a2 + ab2_ref[0].astype(jnp.float32)
                   + pre2).astype(pre3_ref.dtype)


def ff_geglu_kernel(pre_ref, g_ref, b_ref, wv_ref, bv_ref, wg_ref, bg_ref,
                    w2_ref, b2_ref, o_ref, n_scr, acc_scr, *, eps):
    """Fused: LN(pre3) -> GEGLU FF (inner-dim chunked, f32 accumulator)
    -> + ff2_b + pre3 (nhwc_bias_add)."""
    c = pl.program_id(2)

    @pl.when(c == 0)
    def _():
        n_scr[...] = _layernorm(pre_ref[0].astype(jnp.float32),
                                g_ref[0].astype(jnp.float32),
                                b_ref[0].astype(jnp.float32),
                                eps).astype(n_scr.dtype)
        acc_scr[...] = jnp.zeros_like(acc_scr)

    n = n_scr[...]
    hv = (jnp.dot(n, wv_ref[...], preferred_element_type=jnp.float32)
          + bv_ref[0].astype(jnp.float32))
    hg = (jnp.dot(n, wg_ref[...], preferred_element_type=jnp.float32)
          + bg_ref[0].astype(jnp.float32))
    geg = hv * jax.nn.gelu(hg, approximate=False)   # exact erf GELU (bias_geglu)
    acc_scr[...] += jnp.dot(geg.astype(w2_ref.dtype), w2_ref[...],
                            preferred_element_type=jnp.float32)

    @pl.when(c == pl.num_programs(2) - 1)
    def _():
        o_ref[0] = (acc_scr[...] + b2_ref[0].astype(jnp.float32)
                    + pre_ref[0].astype(jnp.float32)).astype(o_ref.dtype)


# ----------------------------------------------------------------------------
# pallas_call wrappers
# ----------------------------------------------------------------------------
def pallas_self_attention(hidden, g, b, wq, wk, wv, wo, heads, eps,
                          *, s_tile=None):
    B, S, D = hidden.shape
    st = s_tile if s_tile is not None else _s_tile_default(S, hidden.dtype)
    assert S % st == 0, (S, st)
    ns = S // st
    ncs = 2 if (B == 1 and ns % 2 == 0) else 1    # use both TCs when batch == 1
    nsp = ns // ncs
    cdt = wq.dtype
    isz = jnp.dtype(hidden.dtype).itemsize
    cost = pl.CostEstimate(
        flops=int(8 * B * S * D * D + 4 * B * S * S * D),
        transcendentals=int(B * heads * S * S),
        bytes_accessed=int((3 * B * S * D + 4 * D * D) * isz))
    kernel = functools.partial(self_attn_kernel, heads=heads, eps=eps)
    tile = lambda bi, ci, si: (bi, ci * nsp + si, 0)

    def build(sb):
        return pl.pallas_call(
            kernel,
            out_shape=jax.ShapeDtypeStruct((B, S, D), hidden.dtype),
            grid=(B, ncs, nsp),
            in_specs=[
                pl.BlockSpec((1, st, D), tile),                       # query tile
                # full sequence (K/V source), consumed only at si == 0.
                # TODO(synk): single-buffer / manual-DMA this block as well.
                pl.BlockSpec((1, S, D), lambda bi, ci, si: (bi, 0, 0)),
                _spec((1, D), single=sb), _spec((1, D), single=sb),   # LN1 g/b
                _spec((D, D), single=sb),                             # Wq (scaled)
                _spec((D, D), single=sb), _spec((D, D), single=sb),   # Wk / Wv
                _spec((D, D), single=sb),                             # Wo
            ],
            out_specs=pl.BlockSpec((1, st, D), tile),
            scratch_shapes=[pltpu.VMEM((S, D), cdt),                  # K cache
                            pltpu.VMEM((S, D), cdt),                  # V cache
                            pltpu.VMEM((st, D), jnp.float32)],        # head concat
            compiler_params=pltpu.CompilerParams(
                dimension_semantics=("parallel", "parallel", "arbitrary"),
                vmem_limit_bytes=_vmem_limit_bytes()),
            cost_estimate=cost,
        )(hidden, hidden, g, b, wq, wk, wv, wo)

    try:
        return build(True)
    except Exception:   # pl.Buffered(1) unsupported -> default double-buffering
        return build(False)


def pallas_cross_attention(attn1, attn1_bias, hidden, attn2_bias, g, b,
                           context, wq, wk, wv, wo, heads, eps, *, s_tile=None):
    B, S, D = attn1.shape
    _, Sc, Dc = context.shape
    st = s_tile if s_tile is not None else _s_tile_default(S, attn1.dtype)
    assert S % st == 0, (S, st)
    ns = S // st
    ncs = 2 if (B == 1 and ns % 2 == 0) else 1
    nsp = ns // ncs
    cdt = wq.dtype
    isz = jnp.dtype(attn1.dtype).itemsize
    cost = pl.CostEstimate(
        flops=int(4 * B * S * D * D + 4 * B * Sc * Dc * D + 4 * B * S * Sc * D),
        transcendentals=int(B * heads * S * Sc),
        bytes_accessed=int((3 * B * S * D + B * Sc * Dc
                            + (2 * D + 2 * Dc) * D) * isz))
    kernel = functools.partial(cross_attn_kernel, heads=heads, eps=eps)
    tile = lambda bi, ci, si: (bi, ci * nsp + si, 0)

    def build(sb):
        return pl.pallas_call(
            kernel,
            out_shape=jax.ShapeDtypeStruct((B, S, D), attn1.dtype),
            grid=(B, ncs, nsp),
            in_specs=[
                pl.BlockSpec((1, st, D), tile),                       # attn1 out
                _spec((1, D), single=sb),                             # attn1 bias
                pl.BlockSpec((1, st, D), tile),                       # hidden (res)
                _spec((1, D), single=sb),                             # attn2 bias
                _spec((1, D), single=sb), _spec((1, D), single=sb),   # LN2 g/b
                pl.BlockSpec((1, Sc, Dc), lambda bi, ci, si: (bi, 0, 0)),  # context
                _spec((D, D), single=sb),                             # Wq (scaled)
                _spec((Dc, D), single=sb), _spec((Dc, D), single=sb), # Wk / Wv
                _spec((D, D), single=sb),                             # Wo
            ],
            out_specs=pl.BlockSpec((1, st, D), tile),                 # pre3
            scratch_shapes=[pltpu.VMEM((Sc, D), cdt),
                            pltpu.VMEM((Sc, D), cdt),
                            pltpu.VMEM((st, D), jnp.float32)],
            compiler_params=pltpu.CompilerParams(
                dimension_semantics=("parallel", "parallel", "arbitrary"),
                vmem_limit_bytes=_vmem_limit_bytes()),
            cost_estimate=cost,
        )(attn1, attn1_bias, hidden, attn2_bias, g, b, context, wq, wk, wv, wo)

    try:
        return build(True)
    except Exception:
        return build(False)


def pallas_ff_geglu(pre3, g, b, w_val, b_val, w_gate, b_gate, w2, b2, eps,
                    *, s_tile=None, inner_chunk=None):
    B, S, D = pre3.shape
    inner = w_val.shape[1]
    st = s_tile if s_tile is not None else _s_tile_default(S, pre3.dtype)
    assert S % st == 0, (S, st)
    ns = S // st
    ch = inner_chunk if inner_chunk is not None else _inner_chunk_default(inner)
    assert inner % ch == 0, (inner, ch)
    nc = inner // ch
    cdt = w_val.dtype
    isz = jnp.dtype(pre3.dtype).itemsize
    cost = pl.CostEstimate(
        flops=int(6 * B * S * D * inner),
        transcendentals=int(B * S * inner),
        bytes_accessed=int((2 * B * S * D + 3 * D * inner) * isz))
    kernel = functools.partial(ff_geglu_kernel, eps=eps)
    tile = lambda bi, si, ci: (bi, si, 0)

    def build(sb):
        wsb = sb and nc == 1   # chunked FF weights: single-buffer only if 1 chunk
        return pl.pallas_call(
            kernel,
            out_shape=jax.ShapeDtypeStruct((B, S, D), pre3.dtype),
            grid=(B, ns, nc),
            in_specs=[
                pl.BlockSpec((1, st, D), tile),                          # pre3
                _spec((1, D), single=sb), _spec((1, D), single=sb),      # LN3 g/b
                _spec((D, ch), lambda bi, si, ci: (0, ci), single=wsb),  # W val
                _spec((1, ch), lambda bi, si, ci: (0, ci), single=wsb),  # b val
                _spec((D, ch), lambda bi, si, ci: (0, ci), single=wsb),  # W gate
                _spec((1, ch), lambda bi, si, ci: (0, ci), single=wsb),  # b gate
                _spec((ch, D), lambda bi, si, ci: (ci, 0), single=wsb),  # W2
                _spec((1, D), single=sb),                                # b2
            ],
            out_specs=pl.BlockSpec((1, st, D), tile),
            scratch_shapes=[pltpu.VMEM((st, D), cdt),                    # LN(pre3)
                            pltpu.VMEM((st, D), jnp.float32)],           # accum
            compiler_params=pltpu.CompilerParams(
                dimension_semantics=("parallel", "parallel", "arbitrary"),
                vmem_limit_bytes=_vmem_limit_bytes()),
            cost_estimate=cost,
        )(pre3, g, b, w_val, b_val, w_gate, b_gate, w2, b2)

    try:
        return build(True)
    except Exception:
        return build(False)


# ----------------------------------------------------------------------------
# One-time parameter preprocessing (all weight re-layouts out of the hot path)
# ----------------------------------------------------------------------------
def prepare_params(p, compute_dtype=None):
    """Fold softmax scale into Wq, split GEGLU val/gate, reshape 1-D vectors
    to (1, N), optionally cast matmul operands to compute_dtype (bf16)."""
    D = p["wq1"].shape[0]
    heads = p["heads"]
    scale = 1.0 / math.sqrt(D // heads)
    inner = p["ff1_w"].shape[1] // 2

    def cvt(x):
        return x if compute_dtype is None else x.astype(compute_dtype)

    return {
        "eps": p["eps"], "heads": heads,
        "norm1_g": cvt(p["norm1_g"].reshape(1, D)),
        "norm1_b": cvt(p["norm1_b"].reshape(1, D)),
        "norm2_g": cvt(p["norm2_g"].reshape(1, D)),
        "norm2_b": cvt(p["norm2_b"].reshape(1, D)),
        "norm3_g": cvt(p["norm3_g"].reshape(1, D)),
        "norm3_b": cvt(p["norm3_b"].reshape(1, D)),
        "wq1": cvt(p["wq1"] * scale), "wk1": cvt(p["wk1"]),
        "wv1": cvt(p["wv1"]), "wo1": cvt(p["wo1"]),
        "attn1_bias": cvt(p["attn1_bias"].reshape(1, D)),
        "wq2": cvt(p["wq2"] * scale), "wk2": cvt(p["wk2"]),
        "wv2": cvt(p["wv2"]), "wo2": cvt(p["wo2"]),
        "attn2_bias": cvt(p["attn2_bias"].reshape(1, D)),
        "ff1_w_val": cvt(p["ff1_w"][:, :inner]),
        "ff1_w_gate": cvt(p["ff1_w"][:, inner:]),
        "ff1_b_val": cvt(p["ff1_b"][:inner].reshape(1, inner)),
        "ff1_b_gate": cvt(p["ff1_b"][inner:].reshape(1, inner)),
        "ff2_w": cvt(p["ff2_w"]), "ff2_b": cvt(p["ff2_b"].reshape(1, D)),
    }


# ----------------------------------------------------------------------------
# Full block forward (3 fused pallas_calls) and pure-JAX reference
# ----------------------------------------------------------------------------
def transformer_block_forward(pp, hidden_states, context,
                              *, s_tile=None, inner_chunk=None):
    eps, heads = pp["eps"], pp["heads"]
    a1 = pallas_self_attention(hidden_states, pp["norm1_g"], pp["norm1_b"],
                               pp["wq1"], pp["wk1"], pp["wv1"], pp["wo1"],
                               heads, eps, s_tile=s_tile)
    pre3 = pallas_cross_attention(a1, pp["attn1_bias"], hidden_states,
                                  pp["attn2_bias"], pp["norm2_g"],
                                  pp["norm2_b"], context,
                                  pp["wq2"], pp["wk2"], pp["wv2"], pp["wo2"],
                                  heads, eps, s_tile=s_tile)
    return pallas_ff_geglu(pre3, pp["norm3_g"], pp["norm3_b"],
                           pp["ff1_w_val"], pp["ff1_b_val"],
                           pp["ff1_w_gate"], pp["ff1_b_gate"],
                           pp["ff2_w"], pp["ff2_b"], eps,
                           s_tile=s_tile, inner_chunk=inner_chunk)


def _ref_ln(x, g, b, eps):
    m = jnp.mean(x, -1, keepdims=True)
    v = jnp.mean(jnp.square(x - m), -1, keepdims=True)
    return (x - m) * jax.lax.rsqrt(v + eps) * g + b


def _ref_attn(x, ctx, wq, wk, wv, wo, heads):
    B, S, D = x.shape
    hd = D // heads
    q = (x @ wq).reshape(B, S, heads, hd)
    k = (ctx @ wk).reshape(B, -1, heads, hd)
    v = (ctx @ wv).reshape(B, -1, heads, hd)
    s = jnp.einsum("bqhd,bkhd->bhqk", q, k) / math.sqrt(hd)
    p = jax.nn.softmax(s, axis=-1)
    o = jnp.einsum("bhqk,bkhd->bqhd", p, v).reshape(B, S, D)
    return o @ wo


def reference_forward(p, hidden_states, context):
    n1 = _ref_ln(hidden_states, p["norm1_g"], p["norm1_b"], p["eps"])
    a1 = _ref_attn(n1, n1, p["wq1"], p["wk1"], p["wv1"], p["wo1"], p["heads"])
    pre2 = a1 + p["attn1_bias"] + hidden_states
    n2 = _ref_ln(pre2, p["norm2_g"], p["norm2_b"], p["eps"])
    a2 = _ref_attn(n2, context, p["wq2"], p["wk2"], p["wv2"], p["wo2"],
                   p["heads"])
    pre3 = a2 + p["attn2_bias"] + pre2
    n3 = _ref_ln(pre3, p["norm3_g"], p["norm3_b"], p["eps"])
    h = n3 @ p["ff1_w"] + p["ff1_b"]
    inner = p["ff1_w"].shape[1] // 2
    g = h[..., :inner] * jax.nn.gelu(h[..., inner:], approximate=False)
    return g @ p["ff2_w"] + p["ff2_b"] + pre3


# ----------------------------------------------------------------------------
if __name__ == "__main__":
    def make_params(key, D, H, Dc, inner):
        ks = jax.random.split(key, 20)
        f = lambda k, shp, s=0.05: (s * jax.random.normal(k, shp)).astype(jnp.float32)
        return {
            "eps": 1e-5, "heads": H,
            "norm1_g": 1.0 + f(ks[0], (D,)), "norm1_b": f(ks[1], (D,)),
            "norm2_g": 1.0 + f(ks[2], (D,)), "norm2_b": f(ks[3], (D,)),
            "norm3_g": 1.0 + f(ks[4], (D,)), "norm3_b": f(ks[5], (D,)),
            "wq1": f(ks[6], (D, D)), "wk1": f(ks[7], (D, D)),
            "wv1": f(ks[8], (D, D)), "wo1": f(ks[9], (D, D)),
            "attn1_bias": f(ks[10], (D,)),
            "wq2": f(ks[11], (D, D)), "wk2": f(ks[12], (Dc, D)),
            "wv2": f(ks[13], (Dc, D)), "wo2": f(ks[14], (D, D)),
            "attn2_bias": f(ks[15], (D,)),
            "ff1_w": f(ks[16], (D, 2 * inner)), "ff1_b": f(ks[17], (2 * inner,)),
            "ff2_w": f(ks[18], (inner, D)),     "ff2_b": f(ks[19], (D,)),
        }

    key = jax.random.PRNGKey(0)
    k0, k1, k2, k3, k4, k5 = jax.random.split(key, 6)

    # --- Test 1 & 2: B=2, S=8, D=32, H=4, context (16, 32); f32 and bf16.
    B, S, D, H, Sc, Dc = 2, 8, 32, 4, 16, 32
    params = make_params(k0, D, H, Dc, 4 * D)
    hidden = jax.random.normal(k1, (B, S, D), dtype=jnp.float32)
    context = jax.random.normal(k2, (B, Sc, Dc), dtype=jnp.float32)
    ref = reference_forward(params, hidden, context)

    out = transformer_block_forward(prepare_params(params), hidden, context)
    jax.block_until_ready(out)
    assert out.shape == (B, S, D) and out.dtype == jnp.float32
    assert jnp.allclose(out, ref, atol=2e-3, rtol=2e-3), (
        float(jnp.max(jnp.abs(out - ref))))

    pp16 = prepare_params(params, compute_dtype=jnp.bfloat16)
    out16 = transformer_block_forward(pp16, hidden.astype(jnp.bfloat16),
                                      context.astype(jnp.bfloat16))
    jax.block_until_ready(out16)
    assert out16.dtype == jnp.bfloat16
    assert jnp.allclose(out16.astype(jnp.float32), ref, atol=3e-2, rtol=3e-2), (
        float(jnp.max(jnp.abs(out16.astype(jnp.float32) - ref))))

    # --- Test 3: multi-tile sequence, batch-1 core-split of the query axis,
    #             and FF inner-dim chunked accumulation (2 chunks).
    B, S, D, H, Sc, Dc = 1, 64, 64, 4, 16, 32
    params3 = make_params(k3, D, H, Dc, 4 * D)
    hidden3 = jax.random.normal(k4, (B, S, D), dtype=jnp.float32)
    context3 = jax.random.normal(k5, (B, Sc, Dc), dtype=jnp.float32)
    ref3 = reference_forward(params3, hidden3, context3)
    out3 = transformer_block_forward(prepare_params(params3), hidden3, context3,
                                     s_tile=16, inner_chunk=128)
    jax.block_until_ready(out3)
    assert jnp.allclose(out3, ref3, atol=2e-3, rtol=2e-3), (
        float(jnp.max(jnp.abs(out3 - ref3))))

    print("KERNEL_OK")
</pallas_src>

<mosaic_0001>
module attributes {stable_mosaic.version = 11 : i64} {
  func.func @self_attn_kernel(%arg0: i32, %arg1: i32, %arg2: i32, %arg3: memref<1x8x32xf32, #tpu.memory_space<vmem>>, %arg4: memref<1x8x32xf32, #tpu.memory_space<vmem>>, %arg5: memref<1x32xf32, #tpu.memory_space<vmem>>, %arg6: memref<1x32xf32, #tpu.memory_space<vmem>>, %arg7: memref<32x32xf32, #tpu.memory_space<vmem>>, %arg8: memref<32x32xf32, #tpu.memory_space<vmem>>, %arg9: memref<32x32xf32, #tpu.memory_space<vmem>>, %arg10: memref<32x32xf32, #tpu.memory_space<vmem>>, %arg11: memref<1x8x32xf32, #tpu.memory_space<vmem>>, %arg12: memref<8x32xf32, #tpu.memory_space<vmem>>, %arg13: memref<8x32xf32, #tpu.memory_space<vmem>>, %arg14: memref<8x32xf32, #tpu.memory_space<vmem>>) attributes {dimension_semantics = [#tpu.dimension_semantics<parallel>, #tpu.dimension_semantics<parallel>, #tpu.dimension_semantics<arbitrary>], iteration_bounds = array<i64: 2, 1, 1>, scalar_prefetch = 0 : i64, scratch_operands = 3 : i64, tpu.core_type = #tpu.core_type<tc>, window_params = [{transform_indices = @transform_0, window_bounds = array<i64: 1, 8, 32>}, {transform_indices = @transform_1, window_bounds = array<i64: 1, 8, 32>}, {pipeline_mode = #tpu.pipeline_mode<synchronous>, transform_indices = @transform_2, window_bounds = array<i64: 1, 32>}, {pipeline_mode = #tpu.pipeline_mode<synchronous>, transform_indices = @transform_3, window_bounds = array<i64: 1, 32>}, {pipeline_mode = #tpu.pipeline_mode<synchronous>, transform_indices = @transform_4, window_bounds = array<i64: 32, 32>}, {pipeline_mode = #tpu.pipeline_mode<synchronous>, transform_indices = @transform_5, window_bounds = array<i64: 32, 32>}, {pipeline_mode = #tpu.pipeline_mode<synchronous>, transform_indices = @transform_6, window_bounds = array<i64: 32, 32>}, {pipeline_mode = #tpu.pipeline_mode<synchronous>, transform_indices = @transform_7, window_bounds = array<i64: 32, 32>}, {transform_indices = @transform_8, window_bounds = array<i64: 1, 8, 32>}]} {
    %c0 = arith.constant 0 : index
    %c0_0 = arith.constant 0 : index
    %0 = vector.load %arg5[%c0, %c0_0] : memref<1x32xf32, #tpu.memory_space<vmem>>, vector<1x32xf32>
    %1 = vector.shape_cast %0 : vector<1x32xf32> to vector<32xf32>
    %c0_1 = arith.constant 0 : index
    %c0_2 = arith.constant 0 : index
    %2 = vector.load %arg6[%c0_1, %c0_2] : memref<1x32xf32, #tpu.memory_space<vmem>>, vector<1x32xf32>
    %3 = vector.shape_cast %2 : vector<1x32xf32> to vector<32xf32>
    %c0_i32 = arith.constant 0 : i32
    %4 = arith.cmpi eq, %arg2, %c0_i32 : i32
    %5 = arith.extui %4 : i1 to i32
    %c0_i32_3 = arith.constant 0 : i32
    %6 = arith.cmpi ne, %5, %c0_i32_3 : i32
    scf.if %6 {
      %c0_47 = arith.constant 0 : index
      %c0_48 = arith.constant 0 : index
      %c0_49 = arith.constant 0 : index
      %107 = vector.load %arg4[%c0_47, %c0_48, %c0_49] : memref<1x8x32xf32, #tpu.memory_space<vmem>>, vector<1x8x32xf32>
      %108 = vector.shape_cast %107 : vector<1x8x32xf32> to vector<8x32xf32>
      %cst_50 = arith.constant dense<0.000000e+00> : vector<8xf32>
      %109 = vector.multi_reduction <add>, %108, %cst_50 [1] : vector<8x32xf32> to vector<8xf32>
      %110 = vector.shape_cast %109 : vector<8xf32> to vector<8x1xf32>
      %cst_51 = arith.constant 3.200000e+01 : f32
      %111 = vector.broadcast %cst_51 : f32 to vector<8x1xf32>
      %112 = arith.divf %110, %111 : vector<8x1xf32>
      %113 = vector.broadcast %112 : vector<8x1xf32> to vector<8x32xf32>
      %114 = arith.subf %108, %113 : vector<8x32xf32>
      %115 = arith.mulf %114, %114 : vector<8x32xf32>
      %cst_52 = arith.constant dense<0.000000e+00> : vector<8xf32>
      %116 = vector.multi_reduction <add>, %115, %cst_52 [1] : vector<8x32xf32> to vector<8xf32>
      %117 = vector.shape_cast %116 : vector<8xf32> to vector<8x1xf32>
      %cst_53 = arith.constant 3.200000e+01 : f32
      %118 = vector.broadcast %cst_53 : f32 to vector<8x1xf32>
      %119 = arith.divf %117, %118 : vector<8x1xf32>
      %120 = vector.broadcast %112 : vector<8x1xf32> to vector<8x32xf32>
      %121 = arith.subf %108, %120 : vector<8x32xf32>
      %cst_54 = arith.constant 9.99999974E-6 : f32
      %122 = vector.broadcast %cst_54 : f32 to vector<8x1xf32>
      %123 = arith.addf %119, %122 : vector<8x1xf32>
      %124 = math.rsqrt %123 : vector<8x1xf32>
      %125 = vector.broadcast %124 : vector<8x1xf32> to vector<8x32xf32>
      %126 = arith.mulf %121, %125 : vector<8x32xf32>
      %127 = vector.shape_cast %1 : vector<32xf32> to vector<1x32xf32>
      %128 = vector.broadcast %127 : vector<1x32xf32> to vector<8x32xf32>
      %129 = arith.mulf %126, %128 : vector<8x32xf32>
      %130 = vector.shape_cast %3 : vector<32xf32> to vector<1x32xf32>
      %131 = vector.broadcast %130 : vector<1x32xf32> to vector<8x32xf32>
      %132 = arith.addf %129, %131 : vector<8x32xf32>
      %c0_55 = arith.constant 0 : index
      %c0_56 = arith.constant 0 : index
      %133 = vector.load %arg8[%c0_55, %c0_56] : memref<32x32xf32, #tpu.memory_space<vmem>>, vector<32x32xf32>
      %cst_57 = arith.constant dense<0.000000e+00> : vector<8x32xf32>
      %134 = tpu.matmul %132, %133, %cst_57 {dimension_numbers = #tpu.dot_dimension_numbers<[1], [0], [0], [1], [0, 0, 1, 1], [], []>} : vector<8x32xf32>, vector<32x32xf32>, vector<8x32xf32> -> vector<8x32xf32>
      %c0_58 = arith.constant 0 : index
      %c0_59 = arith.constant 0 : index
      %135 = vector.load %arg12[%c0_58, %c0_59] : memref<8x32xf32, #tpu.memory_space<vmem>>, vector<8x32xf32>
      tpu.vector_store %arg12[%c0_58, %c0_59], %134 {strides = array<i32>} : memref<8x32xf32, #tpu.memory_space<vmem>>, vector<8x32xf32>,
      %c0_60 = arith.constant 0 : index
      %c0_61 = arith.constant 0 : index
      %136 = vector.load %arg9[%c0_60, %c0_61] : memref<32x32xf32, #tpu.memory_space<vmem>>, vector<32x32xf32>
      %cst_62 = arith.constant dense<0.000000e+00> : vector<8x32xf32>
      %137 = tpu.matmul %132, %136, %cst_62 {dimension_numbers = #tpu.dot_dimension_numbers<[1], [0], [0], [1], [0, 0, 1, 1], [], []>} : vector<8x32xf32>, vector<32x32xf32>, vector<8x32xf32> -> vector<8x32xf32>
      %c0_63 = arith.constant 0 : index
      %c0_64 = arith.constant 0 : index
      %138 = vector.load %arg13[%c0_63, %c0_64] : memref<8x32xf32, #tpu.memory_space<vmem>>, vector<8x32xf32>
      tpu.vector_store %arg13[%c0_63, %c0_64], %137 {strides = array<i32>} : memref<8x32xf32, #tpu.memory_space<vmem>>, vector<8x32xf32>,
    } else {
    }
    %c0_4 = arith.constant 0 : index
    %c0_5 = arith.constant 0 : index
    %c0_6 = arith.constant 0 : index
    %7 = vector.load %arg3[%c0_4, %c0_5, %c0_6] : memref<1x8x32xf32, #tpu.memory_space<vmem>>, vector<1x8x32xf32>
    %8 = vector.shape_cast %7 : vector<1x8x32xf32> to vector<8x32xf32>
    %cst = arith.constant dense<0.000000e+00> : vector<8xf32>
    %9 = vector.multi_reduction <add>, %8, %cst [1] : vector<8x32xf32> to vector<8xf32>
    %10 = vector.shape_cast %9 : vector<8xf32> to vector<8x1xf32>
    %cst_7 = arith.constant 3.200000e+01 : f32
    %11 = vector.broadcast %cst_7 : f32 to vector<8x1xf32>
    %12 = arith.divf %10, %11 : vector<8x1xf32>
    %13 = vector.broadcast %12 : vector<8x1xf32> to vector<8x32xf32>
    %14 = arith.subf %8, %13 : vector<8x32xf32>
    %15 = arith.mulf %14, %14 : vector<8x32xf32>
    %cst_8 = arith.constant dense<0.000000e+00> : vector<8xf32>
    %16 = vector.multi_reduction <add>, %15, %cst_8 [1] : vector<8x32xf32> to vector<8xf32>
    %17 = vector.shape_cast %16 : vector<8xf32> to vector<8x1xf32>
    %cst_9 = arith.constant 3.200000e+01 : f32
    %18 = vector.broadcast %cst_9 : f32 to vector<8x1xf32>
    %19 = arith.divf %17, %18 : vector<8x1xf32>
    %20 = vector.broadcast %12 : vector<8x1xf32> to vector<8x32xf32>
    %21 = arith.subf %8, %20 : vector<8x32xf32>
    %cst_10 = arith.constant 9.99999974E-6 : f32
    %22 = vector.broadcast %cst_10 : f32 to vector<8x1xf32>
    %23 = arith.addf %19, %22 : vector<8x1xf32>
    %24 = math.rsqrt %23 : vector<8x1xf32>
    %25 = vector.broadcast %24 : vector<8x1xf32> to vector<8x32xf32>
    %26 = arith.mulf %21, %25 : vector<8x32xf32>
    %27 = vector.shape_cast %1 : vector<32xf32> to vector<1x32xf32>
    %28 = vector.broadcast %27 : vector<1x32xf32> to vector<8x32xf32>
    %29 = arith.mulf %26, %28 : vector<8x32xf32>
    %30 = vector.shape_cast %3 : vector<32xf32> to vector<1x32xf32>
    %31 = vector.broadcast %30 : vector<1x32xf32> to vector<8x32xf32>
    %32 = arith.addf %29, %31 : vector<8x32xf32>
    %c0_11 = arith.constant 0 : index
    %c0_12 = arith.constant 0 : index
    %33 = vector.load %arg7[%c0_11, %c0_12] : memref<32x32xf32, #tpu.memory_space<vmem>>, vector<32x32xf32>
    %cst_13 = arith.constant dense<0.000000e+00> : vector<8x32xf32>
    %34 = tpu.matmul %32, %33, %cst_13 {dimension_numbers = #tpu.dot_dimension_numbers<[1], [0], [0], [1], [0, 0, 1, 1], [], []>} : vector<8x32xf32>, vector<32x32xf32>, vector<8x32xf32> -> vector<8x32xf32>
    %c0_14 = arith.constant 0 : index
    %c0_15 = arith.constant 0 : index
    %35 = vector.load %arg12[%c0_14, %c0_15] : memref<8x32xf32, #tpu.memory_space<vmem>>, vector<8x32xf32>
    %c0_16 = arith.constant 0 : index
    %c0_17 = arith.constant 0 : index
    %36 = vector.load %arg13[%c0_16, %c0_17] : memref<8x32xf32, #tpu.memory_space<vmem>>, vector<8x32xf32>
    %37 = vector.extract_strided_slice %34 {offsets = [0, 0], sizes = [8, 8], strides = [1, 1]} : vector<8x32xf32> to vector<8x8xf32>
    %38 = vector.extract_strided_slice %35 {offsets = [0, 0], sizes = [8, 8], strides = [1, 1]} : vector<8x32xf32> to vector<8x8xf32>
    %cst_18 = arith.constant dense<0.000000e+00> : vector<8x8xf32>
    %39 = tpu.matmul %37, %38, %cst_18 {dimension_numbers = #tpu.dot_dimension_numbers<[1], [1], [0], [0], [0, 0, 1, 0], [], []>} : vector<8x8xf32>, vector<8x8xf32>, vector<8x8xf32> -> vector<8x8xf32>
    %cst_19 = arith.constant dense<0xFF800000> : vector<8xf32>
    %40 = vector.multi_reduction <maximumf>, %39, %cst_19 [1] : vector<8x8xf32> to vector<8xf32>
    %41 = vector.shape_cast %40 : vector<8xf32> to vector<8x1xf32>
    %42 = vector.broadcast %41 : vector<8x1xf32> to vector<8x8xf32>
    %43 = arith.subf %39, %42 : vector<8x8xf32>
    %44 = math.exp %43 : vector<8x8xf32>
    %cst_20 = arith.constant dense<0.000000e+00> : vector<8xf32>
    %45 = vector.multi_reduction <add>, %44, %cst_20 [1] : vector<8x8xf32> to vector<8xf32>
    %46 = vector.shape_cast %45 : vector<8xf32> to vector<8x1xf32>
    %47 = tpu.reciprocal %46 {approx = true} : vector<8x1xf32> -> vector<8x1xf32>
    %48 = vector.broadcast %47 : vector<8x1xf32> to vector<8x8xf32>
    %49 = arith.mulf %44, %48 : vector<8x8xf32>
    %50 = vector.extract_strided_slice %36 {offsets = [0, 0], sizes = [8, 8], strides = [1, 1]} : vector<8x32xf32> to vector<8x8xf32>
    %cst_21 = arith.constant dense<0.000000e+00> : vector<8x8xf32>
    %51 = tpu.matmul %49, %50, %cst_21 {dimension_numbers = #tpu.dot_dimension_numbers<[1], [0], [0], [1], [0, 0, 1, 1], [], []>} : vector<8x8xf32>, vector<8x8xf32>, vector<8x8xf32> -> vector<8x8xf32>
    %c0_22 = arith.constant 0 : index
    %c0_23 = arith.constant 0 : index
    %52 = vector.load %arg14[%c0_22, %c0_23] : memref<8x32xf32, #tpu.memory_space<vmem>>, vector<8x8xf32>
    tpu.vector_store %arg14[%c0_22, %c0_23], %51 {strides = array<i32>} : memref<8x32xf32, #tpu.memory_space<vmem>>, vector<8x8xf32>,
    %53 = vector.extract_strided_slice %34 {offsets = [0, 8], sizes = [8, 8], strides = [1, 1]} : vector<8x32xf32> to vector<8x8xf32>
    %54 = vector.extract_strided_slice %35 {offsets = [0, 8], sizes = [8, 8], strides = [1, 1]} : vector<8x32xf32> to vector<8x8xf32>
    %cst_24 = arith.constant dense<0.000000e+00> : vector<8x8xf32>
    %55 = tpu.matmul %53, %54, %cst_24 {dimension_numbers = #tpu.dot_dimension_numbers<[1], [1], [0], [0], [0, 0, 1, 0], [], []>} : vector<8x8xf32>, vector<8x8xf32>, vector<8x8xf32> -> vector<8x8xf32>
    %cst_25 = arith.constant dense<0xFF800000> : vector<8xf32>
    %56 = vector.multi_reduction <maximumf>, %55, %cst_25 [1] : vector<8x8xf32> to vector<8xf32>
    %57 = vector.shape_cast %56 : vector<8xf32> to vector<8x1xf32>
    %58 = vector.broadcast %57 : vector<8x1xf32> to vector<8x8xf32>
    %59 = arith.subf %55, %58 : vector<8x8xf32>
    %60 = math.exp %59 : vector<8x8xf32>
    %cst_26 = arith.constant dense<0.000000e+00> : vector<8xf32>
    %61 = vector.multi_reduction <add>, %60, %cst_26 [1] : vector<8x8xf32> to vector<8xf32>
    %62 = vector.shape_cast %61 : vector<8xf32> to vector<8x1xf32>
    %63 = tpu.reciprocal %62 {approx = true} : vector<8x1xf32> -> vector<8x1xf32>
    %64 = vector.broadcast %63 : vector<8x1xf32> to vector<8x8xf32>
    %65 = arith.mulf %60, %64 : vector<8x8xf32>
    %66 = vector.extract_strided_slice %36 {offsets = [0, 8], sizes = [8, 8], strides = [1, 1]} : vector<8x32xf32> to vector<8x8xf32>
    %cst_27 = arith.constant dense<0.000000e+00> : vector<8x8xf32>
    %67 = tpu.matmul %65, %66, %cst_27 {dimension_numbers = #tpu.dot_dimension_numbers<[1], [0], [0], [1], [0, 0, 1, 1], [], []>} : vector<8x8xf32>, vector<8x8xf32>, vector<8x8xf32> -> vector<8x8xf32>
    %c0_28 = arith.constant 0 : index
    %c8 = arith.constant 8 : index
    %68 = vector.load %arg14[%c0_28, %c8] : memref<8x32xf32, #tpu.memory_space<vmem>>, vector<8x8xf32>
    tpu.vector_store %arg14[%c0_28, %c8], %67 {strides = array<i32>} : memref<8x32xf32, #tpu.memory_space<vmem>>, vector<8x8xf32>,
    %69 = vector.extract_strided_slice %34 {offsets = [0, 16], sizes = [8, 8], strides = [1, 1]} : vector<8x32xf32> to vector<8x8xf32>
    %70 = vector.extract_strided_slice %35 {offsets = [0, 16], sizes = [8, 8], strides = [1, 1]} : vector<8x32xf32> to vector<8x8xf32>
    %cst_29 = arith.constant dense<0.000000e+00> : vector<8x8xf32>
    %71 = tpu.matmul %69, %70, %cst_29 {dimension_numbers = #tpu.dot_dimension_numbers<[1], [1], [0], [0], [0, 0, 1, 0], [], []>} : vector<8x8xf32>, vector<8x8xf32>, vector<8x8xf32> -> vector<8x8xf32>
    %cst_30 = arith.constant dense<0xFF800000> : vector<8xf32>
    %72 = vector.multi_reduction <maximumf>, %71, %cst_30 [1] : vector<8x8xf32> to vector<8xf32>
    %73 = vector.shape_cast %72 : vector<8xf32> to vector<8x1xf32>
    %74 = vector.broadcast %73 : vector<8x1xf32> to vector<8x8xf32>
    %75 = arith.subf %71, %74 : vector<8x8xf32>
    %76 = math.exp %75 : vector<8x8xf32>
    %cst_31 = arith.constant dense<0.000000e+00> : vector<8xf32>
    %77 = vector.multi_reduction <add>, %76, %cst_31 [1] : vector<8x8xf32> to vector<8xf32>
    %78 = vector.shape_cast %77 : vector<8xf32> to vector<8x1xf32>
    %79 = tpu.reciprocal %78 {approx = true} : vector<8x1xf32> -> vector<8x1xf32>
    %80 = vector.broadcast %79 : vector<8x1xf32> to vector<8x8xf32>
    %81 = arith.mulf %76, %80 : vector<8x8xf32>
    %82 = vector.extract_strided_slice %36 {offsets = [0, 16], sizes = [8, 8], strides = [1, 1]} : vector<8x32xf32> to vector<8x8xf32>
    %cst_32 = arith.constant dense<0.000000e+00> : vector<8x8xf32>
    %83 = tpu.matmul %81, %82, %cst_32 {dimension_numbers = #tpu.dot_dimension_numbers<[1], [0], [0], [1], [0, 0, 1, 1], [], []>} : vector<8x8xf32>, vector<8x8xf32>, vector<8x8xf32> -> vector<8x8xf32>
    %c0_33 = arith.constant 0 : index
    %c16 = arith.constant 16 : index
    %84 = vector.load %arg14[%c0_33, %c16] : memref<8x32xf32, #tpu.memory_space<vmem>>, vector<8x8xf32>
    tpu.vector_store %arg14[%c0_33, %c16], %83 {strides = array<i32>} : memref<8x32xf32, #tpu.memory_space<vmem>>, vector<8x8xf32>,
    %85 = vector.extract_strided_slice %34 {offsets = [0, 24], sizes = [8, 8], strides = [1, 1]} : vector<8x32xf32> to vector<8x8xf32>
    %86 = vector.extract_strided_slice %35 {offsets = [0, 24], sizes = [8, 8], strides = [1, 1]} : vector<8x32xf32> to vector<8x8xf32>
    %cst_34 = arith.constant dense<0.000000e+00> : vector<8x8xf32>
    %87 = tpu.matmul %85, %86, %cst_34 {dimension_numbers = #tpu.dot_dimension_numbers<[1], [1], [0], [0], [0, 0, 1, 0], [], []>} : vector<8x8xf32>, vector<8x8xf32>, vector<8x8xf32> -> vector<8x8xf32>
    %cst_35 = arith.constant dense<0xFF800000> : vector<8xf32>
    %88 = vector.multi_reduction <maximumf>, %87, %cst_35 [1] : vector<8x8xf32> to vector<8xf32>
    %89 = vector.shape_cast %88 : vector<8xf32> to vector<8x1xf32>
    %90 = vector.broadcast %89 : vector<8x1xf32> to vector<8x8xf32>
    %91 = arith.subf %87, %90 : vector<8x8xf32>
    %92 = math.exp %91 : vector<8x8xf32>
    %cst_36 = arith.constant dense<0.000000e+00> : vector<8xf32>
    %93 = vector.multi_reduction <add>, %92, %cst_36 [1] : vector<8x8xf32> to vector<8xf32>
    %94 = vector.shape_cast %93 : vector<8xf32> to vector<8x1xf32>
    %95 = tpu.reciprocal %94 {approx = true} : vector<8x1xf32> -> vector<8x1xf32>
    %96 = vector.broadcast %95 : vector<8x1xf32> to vector<8x8xf32>
    %97 = arith.mulf %92, %96 : vector<8x8xf32>
    %98 = vector.extract_strided_slice %36 {offsets = [0, 24], sizes = [8, 8], strides = [1, 1]} : vector<8x32xf32> to vector<8x8xf32>
    %cst_37 = arith.constant dense<0.000000e+00> : vector<8x8xf32>
    %99 = tpu.matmul %97, %98, %cst_37 {dimension_numbers = #tpu.dot_dimension_numbers<[1], [0], [0], [1], [0, 0, 1, 1], [], []>} : vector<8x8xf32>, vector<8x8xf32>, vector<8x8xf32> -> vector<8x8xf32>
    %c0_38 = arith.constant 0 : index
    %c24 = arith.constant 24 : index
    %100 = vector.load %arg14[%c0_38, %c24] : memref<8x32xf32, #tpu.memory_space<vmem>>, vector<8x8xf32>
    tpu.vector_store %arg14[%c0_38, %c24], %99 {strides = array<i32>} : memref<8x32xf32, #tpu.memory_space<vmem>>, vector<8x8xf32>,
    %c0_39 = arith.constant 0 : index
    %c0_40 = arith.constant 0 : index
    %101 = vector.load %arg14[%c0_39, %c0_40] : memref<8x32xf32, #tpu.memory_space<vmem>>, vector<8x32xf32>
    %c0_41 = arith.constant 0 : index
    %c0_42 = arith.constant 0 : index
    %102 = vector.load %arg10[%c0_41, %c0_42] : memref<32x32xf32, #tpu.memory_space<vmem>>, vector<32x32xf32>
    %cst_43 = arith.constant dense<0.000000e+00> : vector<8x32xf32>
    %103 = tpu.matmul %101, %102, %cst_43 {dimension_numbers = #tpu.dot_dimension_numbers<[1], [0], [0], [1], [0, 0, 1, 1], [], []>} : vector<8x32xf32>, vector<32x32xf32>, vector<8x32xf32> -> vector<8x32xf32>
    %c0_44 = arith.constant 0 : index
    %c0_45 = arith.constant 0 : index
    %c0_46 = arith.constant 0 : index
    %104 = vector.load %arg11[%c0_44, %c0_45, %c0_46] : memref<1x8x32xf32, #tpu.memory_space<vmem>>, vector<1x8x32xf32>
    %105 = vector.shape_cast %104 : vector<1x8x32xf32> to vector<8x32xf32>
    %106 = vector.shape_cast %103 : vector<8x32xf32> to vector<1x8x32xf32>
    tpu.vector_store %arg11[%c0_44, %c0_45, %c0_46], %106 {strides = array<i32>} : memref<1x8x32xf32, #tpu.memory_space<vmem>>, vector<1x8x32xf32>,
    return
  }
  func.func @transform_0(%arg0: i32, %arg1: i32, %arg2: i32) -> (i32, i32, i32) {
    %c1_i32 = arith.constant 1 : i32
    %0 = arith.muli %arg1, %c1_i32 : i32
    %1 = arith.addi %0, %arg2 : i32
    %c0_i32 = arith.constant 0 : i32
    %c0_i32_0 = arith.constant 0 : i32
    return %arg0, %1, %c0_i32 : i32, i32, i32
  }
  func.func @transform_1(%arg0: i32, %arg1: i32, %arg2: i32) -> (i32, i32, i32) {
    %c0_i32 = arith.constant 0 : i32
    %c0_i32_0 = arith.constant 0 : i32
    %c0_i32_1 = arith.constant 0 : i32
    return %arg0, %c0_i32, %c0_i32_0 : i32, i32, i32
  }
  func.func @transform_2(%arg0: i32, %arg1: i32, %arg2: i32) -> (i32, i32) {
    %c0_i32 = arith.constant 0 : i32
    %c0_i32_0 = arith.constant 0 : i32
    %c0_i32_1 = arith.constant 0 : i32
    return %c0_i32, %c0_i32_0 : i32, i32
  }
  func.func @transform_3(%arg0: i32, %arg1: i32, %arg2: i32) -> (i32, i32) {
    %c0_i32 = arith.constant 0 : i32
    %c0_i32_0 = arith.constant 0 : i32
    %c0_i32_1 = arith.constant 0 : i32
    return %c0_i32, %c0_i32_0 : i32, i32
  }
  func.func @transform_4(%arg0: i32, %arg1: i32, %arg2: i32) -> (i32, i32) {
    %c0_i32 = arith.constant 0 : i32
    %c0_i32_0 = arith.constant 0 : i32
    %c0_i32_1 = arith.constant 0 : i32
    return %c0_i32, %c0_i32_0 : i32, i32
  }
  func.func @transform_5(%arg0: i32, %arg1: i32, %arg2: i32) -> (i32, i32) {
    %c0_i32 = arith.constant 0 : i32
    %c0_i32_0 = arith.constant 0 : i32
    %c0_i32_1 = arith.constant 0 : i32
    return %c0_i32, %c0_i32_0 : i32, i32
  }
  func.func @transform_6(%arg0: i32, %arg1: i32, %arg2: i32) -> (i32, i32) {
    %c0_i32 = arith.constant 0 : i32
    %c0_i32_0 = arith.constant 0 : i32
    %c0_i32_1 = arith.constant 0 : i32
    return %c0_i32, %c0_i32_0 : i32, i32
  }
  func.func @transform_7(%arg0: i32, %arg1: i32, %arg2: i32) -> (i32, i32) {
    %c0_i32 = arith.constant 0 : i32
    %c0_i32_0 = arith.constant 0 : i32
    %c0_i32_1 = arith.constant 0 : i32
    return %c0_i32, %c0_i32_0 : i32, i32
  }
  func.func @transform_8(%arg0: i32, %arg1: i32, %arg2: i32) -> (i32, i32, i32) {
    %c1_i32 = arith.constant 1 : i32
    %0 = arith.muli %arg1, %c1_i32 : i32
    %1 = arith.addi %0, %arg2 : i32
    %c0_i32 = arith.constant 0 : i32
    %c0_i32_0 = arith.constant 0 : i32
    return %arg0, %1, %c0_i32 : i32, i32, i32
  }
}

module attributes {stable_mosaic.version = 11 : i64} {
  func.func @self_attn_kernel(%arg0: i32, %arg1: i32, %arg2: i32, %arg3: memref<1x8x32xf32, #tpu.memory_space<vmem>>, %arg4: memref<1x8x32xf32, #tpu.memory_space<vmem>>, %arg5: memref<1x32xf32, #tpu.memory_space<vmem>>, %arg6: memref<1x32xf32, #tpu.memory_space<vmem>>, %arg7: memref<32x32xf32, #tpu.memory_space<vmem>>, %arg8: memref<32x32xf32, #tpu.memory_space<vmem>>, %arg9: memref<32x32xf32, #tpu.memory_space<vmem>>, %arg10: memref<32x32xf32, #tpu.memory_space<vmem>>, %arg11: memref<1x8x32xf32, #tpu.memory_space<vmem>>, %arg12: memref<8x32xf32, #tpu.memory_space<vmem>>, %arg13: memref<8x32xf32, #tpu.memory_space<vmem>>, %arg14: memref<8x32xf32, #tpu.memory_space<vmem>>) attributes {dimension_semantics = [#tpu.dimension_semantics<parallel>, #tpu.dimension_semantics<parallel>, #tpu.dimension_semantics<arbitrary>], iteration_bounds = array<i64: 2, 1, 1>, scalar_prefetch = 0 : i64, scratch_operands = 3 : i64, tpu.core_type = #tpu.core_type<tc>, window_params = [{transform_indices = @transform_0, window_bounds = array<i64: 1, 8, 32>}, {transform_indices = @transform_1, window_bounds = array<i64: 1, 8, 32>}, {pipeline_mode = #tpu.pipeline_mode<synchronous>, transform_indices = @transform_2, window_bounds = array<i64: 1, 32>}, {pipeline_mode = #tpu.pipeline_mode<synchronous>, transform_indices = @transform_3, window_bounds = array<i64: 1, 32>}, {pipeline_mode = #tpu.pipeline_mode<synchronous>, transform_indices = @transform_4, window_bounds = array<i64: 32, 32>}, {pipeline_mode = #tpu.pipeline_mode<synchronous>, transform_indices = @transform_5, window_bounds = array<i64: 32, 32>}, {pipeline_mode = #tpu.pipeline_mode<synchronous>, transform_indices = @transform_6, window_bounds = array<i64: 32, 32>}, {pipeline_mode = #tpu.pipeline_mode<synchronous>, transform_indices = @transform_7, window_bounds = array<i64: 32, 32>}, {transform_indices = @transform_8, window_bounds = array<i64: 1, 8, 32>}]} {
    %c0 = arith.constant 0 : index
    %c0_0 = arith.constant 0 : index
    %0 = vector.load %arg5[%c0, %c0_0] : memref<1x32xf32, #tpu.memory_space<vmem>>, vector<1x32xf32>
    %1 = vector.shape_cast %0 : vector<1x32xf32> to vector<32xf32>
    %c0_1 = arith.constant 0 : index
    %c0_2 = arith.constant 0 : index
    %2 = vector.load %arg6[%c0_1, %c0_2] : memref<1x32xf32, #tpu.memory_space<vmem>>, vector<1x32xf32>
    %3 = vector.shape_cast %2 : vector<1x32xf32> to vector<32xf32>
    %c0_i32 = arith.constant 0 : i32
    %4 = arith.cmpi eq, %arg2, %c0_i32 : i32
    %5 = arith.extui %4 : i1 to i32
    %c0_i32_3 = arith.constant 0 : i32
    %6 = arith.cmpi ne, %5, %c0_i32_3 : i32
    scf.if %6 {
      %c0_47 = arith.constant 0 : index
      %c0_48 = arith.constant 0 : index
      %c0_49 = arith.constant 0 : index
      %107 = vector.load %arg4[%c0_47, %c0_48, %c0_49] : memref<1x8x32xf32, #tpu.memory_space<vmem>>, vector<1x8x32xf32>
      %108 = vector.shape_cast %107 : vector<1x8x32xf32> to vector<8x32xf32>
      %cst_50 = arith.constant dense<0.000000e+00> : vector<8xf32>
      %109 = vector.multi_reduction <add>, %108, %cst_50 [1] : vector<8x32xf32> to vector<8xf32>
      %110 = vector.shape_cast %109 : vector<8xf32> to vector<8x1xf32>
      %cst_51 = arith.constant 3.200000e+01 : f32
      %111 = vector.broadcast %cst_51 : f32 to vector<8x1xf32>
      %112 = arith.divf %110, %111 : vector<8x1xf32>
      %113 = vector.broadcast %112 : vector<8x1xf32> to vector<8x32xf32>
      %114 = arith.subf %108, %113 : vector<8x32xf32>
      %115 = arith.mulf %114, %114 : vector<8x32xf32>
      %cst_52 = arith.constant dense<0.000000e+00> : vector<8xf32>
      %116 = vector.multi_reduction <add>, %115, %cst_52 [1] : vector<8x32xf32> to vector<8xf32>
      %117 = vector.shape_cast %116 : vector<8xf32> to vector<8x1xf32>
      %cst_53 = arith.constant 3.200000e+01 : f32
      %118 = vector.broadcast %cst_53 : f32 to vector<8x1xf32>
      %119 = arith.divf %117, %118 : vector<8x1xf32>
      %120 = vector.broadcast %112 : vector<8x1xf32> to vector<8x32xf32>
      %121 = arith.subf %108, %120 : vector<8x32xf32>
      %cst_54 = arith.constant 9.99999974E-6 : f32
      %122 = vector.broadcast %cst_54 : f32 to vector<8x1xf32>
      %123 = arith.addf %119, %122 : vector<8x1xf32>
      %124 = math.rsqrt %123 : vector<8x1xf32>
      %125 = vector.broadcast %124 : vector<8x1xf32> to vector<8x32xf32>
      %126 = arith.mulf %121, %125 : vector<8x32xf32>
      %127 = vector.shape_cast %1 : vector<32xf32> to vector<1x32xf32>
      %128 = vector.broadcast %127 : vector<1x32xf32> to vector<8x32xf32>
      %129 = arith.mulf %126, %128 : vector<8x32xf32>
      %130 = vector.shape_cast %3 : vector<32xf32> to vector<1x32xf32>
      %131 = vector.broadcast %130 : vector<1x32xf32> to vector<8x32xf32>
      %132 = arith.addf %129, %131 : vector<8x32xf32>
      %c0_55 = arith.constant 0 : index
      %c0_56 = arith.constant 0 : index
      %133 = vector.load %arg8[%c0_55, %c0_56] : memref<32x32xf32, #tpu.memory_space<vmem>>, vector<32x32xf32>
      %cst_57 = arith.constant dense<0.000000e+00> : vector<8x32xf32>
      %134 = tpu.matmul %132, %133, %cst_57 {dimension_numbers = #tpu.dot_dimension_numbers<[1], [0], [0], [1], [0, 0, 1, 1], [], []>} : vector<8x32xf32>, vector<32x32xf32>, vector<8x32xf32> -> vector<8x32xf32>
      %c0_58 = arith.constant 0 : index
      %c0_59 = arith.constant 0 : index
      %135 = vector.load %arg12[%c0_58, %c0_59] : memref<8x32xf32, #tpu.memory_space<vmem>>, vector<8x32xf32>
      tpu.vector_store %arg12[%c0_58, %c0_59], %134 {strides = array<i32>} : memref<8x32xf32, #tpu.memory_space<vmem>>, vector<8x32xf32>,
      %c0_60 = arith.constant 0 : index
      %c0_61 = arith.constant 0 : index
      %136 = vector.load %arg9[%c0_60, %c0_61] : memref<32x32xf32, #tpu.memory_space<vmem>>, vector<32x32xf32>
      %cst_62 = arith.constant dense<0.000000e+00> : vector<8x32xf32>
      %137 = tpu.matmul %132, %136, %cst_62 {dimension_numbers = #tpu.dot_dimension_numbers<[1], [0], [0], [1], [0, 0, 1, 1], [], []>} : vector<8x32xf32>, vector<32x32xf32>, vector<8x32xf32> -> vector<8x32xf32>
      %c0_63 = arith.constant 0 : index
      %c0_64 = arith.constant 0 : index
      %138 = vector.load %arg13[%c0_63, %c0_64] : memref<8x32xf32, #tpu.memory_space<vmem>>, vector<8x32xf32>
      tpu.vector_store %arg13[%c0_63, %c0_64], %137 {strides = array<i32>} : memref<8x32xf32, #tpu.memory_space<vmem>>, vector<8x32xf32>,
    } else {
    }
    %c0_4 = arith.constant 0 : index
    %c0_5 = arith.constant 0 : index
    %c0_6 = arith.constant 0 : index
    %7 = vector.load %arg3[%c0_4, %c0_5, %c0_6] : memref<1x8x32xf32, #tpu.memory_space<vmem>>, vector<1x8x32xf32>
    %8 = vector.shape_cast %7 : vector<1x8x32xf32> to vector<8x32xf32>
    %cst = arith.constant dense<0.000000e+00> : vector<8xf32>
    %9 = vector.multi_reduction <add>, %8, %cst [1] : vector<8x32xf32> to vector<8xf32>
    %10 = vector.shape_cast %9 : vector<8xf32> to vector<8x1xf32>
    %cst_7 = arith.constant 3.200000e+01 : f32
    %11 = vector.broadcast %cst_7 : f32 to vector<8x1xf32>
    %12 = arith.divf %10, %11 : vector<8x1xf32>
    %13 = vector.broadcast %12 : vector<8x1xf32> to vector<8x32xf32>
    %14 = arith.subf %8, %13 : vector<8x32xf32>
    %15 = arith.mulf %14, %14 : vector<8x32xf32>
    %cst_8 = arith.constant dense<0.000000e+00> : vector<8xf32>
    %16 = vector.multi_reduction <add>, %15, %cst_8 [1] : vector<8x32xf32> to vector<8xf32>
    %17 = vector.shape_cast %16 : vector<8xf32> to vector<8x1xf32>
    %cst_9 = arith.constant 3.200000e+01 : f32
    %18 = vector.broadcast %cst_9 : f32 to vector<8x1xf32>
    %19 = arith.divf %17, %18 : vector<8x1xf32>
    %20 = vector.broadcast %12 : vector<8x1xf32> to vector<8x32xf32>
    %21 = arith.subf %8, %20 : vector<8x32xf32>
    %cst_10 = arith.constant 9.99999974E-6 : f32
    %22 = vector.broadcast %cst_10 : f32 to vector<8x1xf32>
    %23 = arith.addf %19, %22 : vector<8x1xf32>
    %24 = math.rsqrt %23 : vector<8x1xf32>
    %25 = vector.broadcast %24 : vector<8x1xf32> to vector<8x32xf32>
    %26 = arith.mulf %21, %25 : vector<8x32xf32>
    %27 = vector.shape_cast %1 : vector<32xf32> to vector<1x32xf32>
    %28 = vector.broadcast %27 : vector<1x32xf32> to vector<8x32xf32>
    %29 = arith.mulf %26, %28 : vector<8x32xf32>
    %30 = vector.shape_cast %3 : vector<32xf32> to vector<1x32xf32>
    %31 = vector.broadcast %30 : vector<1x32xf32> to vector<8x32xf32>
    %32 = arith.addf %29, %31 : vector<8x32xf32>
    %c0_11 = arith.constant 0 : index
    %c0_12 = arith.constant 0 : index
    %33 = vector.load %arg7[%c0_11, %c0_12] : memref<32x32xf32, #tpu.memory_space<vmem>>, vector<32x32xf32>
    %cst_13 = arith.constant dense<0.000000e+00> : vector<8x32xf32>
    %34 = tpu.matmul %32, %33, %cst_13 {dimension_numbers = #tpu.dot_dimension_numbers<[1], [0], [0], [1], [0, 0, 1, 1], [], []>} : vector<8x32xf32>, vector<32x32xf32>, vector<8x32xf32> -> vector<8x32xf32>
    %c0_14 = arith.constant 0 : index
    %c0_15 = arith.constant 0 : index
    %35 = vector.load %arg12[%c0_14, %c0_15] : memref<8x32xf32, #tpu.memory_space<vmem>>, vector<8x32xf32>
    %c0_16 = arith.constant 0 : index
    %c0_17 = arith.constant 0 : index
    %36 = vector.load %arg13[%c0_16, %c0_17] : memref<8x32xf32, #tpu.memory_space<vmem>>, vector<8x32xf32>
    %37 = vector.extract_strided_slice %34 {offsets = [0, 0], sizes = [8, 8], strides = [1, 1]} : vector<8x32xf32> to vector<8x8xf32>
    %38 = vector.extract_strided_slice %35 {offsets = [0, 0], sizes = [8, 8], strides = [1, 1]} : vector<8x32xf32> to vector<8x8xf32>
    %cst_18 = arith.constant dense<0.000000e+00> : vector<8x8xf32>
    %39 = tpu.matmul %37, %38, %cst_18 {dimension_numbers = #tpu.dot_dimension_numbers<[1], [1], [0], [0], [0, 0, 1, 0], [], []>} : vector<8x8xf32>, vector<8x8xf32>, vector<8x8xf32> -> vector<8x8xf32>
    %cst_19 = arith.constant dense<0xFF800000> : vector<8xf32>
    %40 = vector.multi_reduction <maximumf>, %39, %cst_19 [1] : vector<8x8xf32> to vector<8xf32>
    %41 = vector.shape_cast %40 : vector<8xf32> to vector<8x1xf32>
    %42 = vector.broadcast %41 : vector<8x1xf32> to vector<8x8xf32>
    %43 = arith.subf %39, %42 : vector<8x8xf32>
    %44 = math.exp %43 : vector<8x8xf32>
    %cst_20 = arith.constant dense<0.000000e+00> : vector<8xf32>
    %45 = vector.multi_reduction <add>, %44, %cst_20 [1] : vector<8x8xf32> to vector<8xf32>
    %46 = vector.shape_cast %45 : vector<8xf32> to vector<8x1xf32>
    %47 = tpu.reciprocal %46 {approx = true} : vector<8x1xf32> -> vector<8x1xf32>
    %48 = vector.broadcast %47 : vector<8x1xf32> to vector<8x8xf32>
    %49 = arith.mulf %44, %48 : vector<8x8xf32>
    %50 = vector.extract_strided_slice %36 {offsets = [0, 0], sizes = [8, 8], strides = [1, 1]} : vector<8x32xf32> to vector<8x8xf32>
    %cst_21 = arith.constant dense<0.000000e+00> : vector<8x8xf32>
    %51 = tpu.matmul %49, %50, %cst_21 {dimension_numbers = #tpu.dot_dimension_numbers<[1], [0], [0], [1], [0, 0, 1, 1], [], []>} : vector<8x8xf32>, vector<8x8xf32>, vector<8x8xf32> -> vector<8x8xf32>
    %c0_22 = arith.constant 0 : index
    %c0_23 = arith.constant 0 : index
    %52 = vector.load %arg14[%c0_22, %c0_23] : memref<8x32xf32, #tpu.memory_space<vmem>>, vector<8x8xf32>
    tpu.vector_store %arg14[%c0_22, %c0_23], %51 {strides = array<i32>} : memref<8x32xf32, #tpu.memory_space<vmem>>, vector<8x8xf32>,
    %53 = vector.extract_strided_slice %34 {offsets = [0, 8], sizes = [8, 8], strides = [1, 1]} : vector<8x32xf32> to vector<8x8xf32>
    %54 = vector.extract_strided_slice %35 {offsets = [0, 8], sizes = [8, 8], strides = [1, 1]} : vector<8x32xf32> to vector<8x8xf32>
    %cst_24 = arith.constant dense<0.000000e+00> : vector<8x8xf32>
    %55 = tpu.matmul %53, %54, %cst_24 {dimension_numbers = #tpu.dot_dimension_numbers<[1], [1], [0], [0], [0, 0, 1, 0], [], []>} : vector<8x8xf32>, vector<8x8xf32>, vector<8x8xf32> -> vector<8x8xf32>
    %cst_25 = arith.constant dense<0xFF800000> : vector<8xf32>
    %56 = vector.multi_reduction <maximumf>, %55, %cst_25 [1] : vector<8x8xf32> to vector<8xf32>
    %57 = vector.shape_cast %56 : vector<8xf32> to vector<8x1xf32>
    %58 = vector.broadcast %57 : vector<8x1xf32> to vector<8x8xf32>
    %59 = arith.subf %55, %58 : vector<8x8xf32>
    %60 = math.exp %59 : vector<8x8xf32>
    %cst_26 = arith.constant dense<0.000000e+00> : vector<8xf32>
    %61 = vector.multi_reduction <add>, %60, %cst_26 [1] : vector<8x8xf32> to vector<8xf32>
    %62 = vector.shape_cast %61 : vector<8xf32> to vector<8x1xf32>
    %63 = tpu.reciprocal %62 {approx = true} : vector<8x1xf32> -> vector<8x1xf32>
    %64 = vector.broadcast %63 : vector<8x1xf32> to vector<8x8xf32>
    %65 = arith.mulf %60, %64 : vector<8x8xf32>
    %66 = vector.extract_strided_slice %36 {offsets = [0, 8], sizes = [8, 8], strides = [1, 1]} : vector<8x32xf32> to vector<8x8xf32>
    %cst_27 = arith.constant dense<0.000000e+00> : vector<8x8xf32>
    %67 = tpu.matmul %65, %66, %cst_27 {dimension_numbers = #tpu.dot_dimension_numbers<[1], [0], [0], [1], [0, 0, 1, 1], [], []>} : vector<8x8xf32>, vector<8x8xf32>, vector<8x8xf32> -> vector<8x8xf32>
    %c0_28 = arith.constant 0 : index
    %c8 = arith.constant 8 : index
    %68 = vector.load %arg14[%c0_28, %c8] : memref<8x32xf32, #tpu.memory_space<vmem>>, vector<8x8xf32>
    tpu.vector_store %arg14[%c0_28, %c8], %67 {strides = array<i32>} : memref<8x32xf32, #tpu.memory_space<vmem>>, vector<8x8xf32>,
    %69 = vector.extract_strided_slice %34 {offsets = [0, 16], sizes = [8, 8], strides = [1, 1]} : vector<8x32xf32> to vector<8x8xf32>
    %70 = vector.extract_strided_slice %35 {offsets = [0, 16], sizes = [8, 8], strides = [1, 1]} : vector<8x32xf32> to vector<8x8xf32>
    %cst_29 = arith.constant dense<0.000000e+00> : vector<8x8xf32>
    %71 = tpu.matmul %69, %70, %cst_29 {dimension_numbers = #tpu.dot_dimension_numbers<[1], [1], [0], [0], [0, 0, 1, 0], [], []>} : vector<8x8xf32>, vector<8x8xf32>, vector<8x8xf32> -> vector<8x8xf32>
    %cst_30 = arith.constant dense<0xFF800000> : vector<8xf32>
    %72 = vector.multi_reduction <maximumf>, %71, %cst_30 [1] : vector<8x8xf32> to vector<8xf32>
    %73 = vector.shape_cast %72 : vector<8xf32> to vector<8x1xf32>
    %74 = vector.broadcast %73 : vector<8x1xf32> to vector<8x8xf32>
    %75 = arith.subf %71, %74 : vector<8x8xf32>
    %76 = math.exp %75 : vector<8x8xf32>
    %cst_31 = arith.constant dense<0.000000e+00> : vector<8xf32>
    %77 = vector.multi_reduction <add>, %76, %cst_31 [1] : vector<8x8xf32> to vector<8xf32>
    %78 = vector.shape_cast %77 : vector<8xf32> to vector<8x1xf32>
    %79 = tpu.reciprocal %78 {approx = true} : vector<8x1xf32> -> vector<8x1xf32>
    %80 = vector.broadcast %79 : vector<8x1xf32> to vector<8x8xf32>
    %81 = arith.mulf %76, %80 : vector<8x8xf32>
    %82 = vector.extract_strided_slice %36 {offsets = [0, 16], sizes = [8, 8], strides = [1, 1]} : vector<8x32xf32> to vector<8x8xf32>
    %cst_32 = arith.constant dense<0.000000e+00> : vector<8x8xf32>
    %83 = tpu.matmul %81, %82, %cst_32 {dimension_numbers = #tpu.dot_dimension_numbers<[1], [0], [0], [1], [0, 0, 1, 1], [], []>} : vector<8x8xf32>, vector<8x8xf32>, vector<8x8xf32> -> vector<8x8xf32>
    %c0_33 = arith.constant 0 : index
    %c16 = arith.constant 16 : index
    %84 = vector.load %arg14[%c0_33, %c16] : memref<8x32xf32, #tpu.memory_space<vmem>>, vector<8x8xf32>
    tpu.vector_store %arg14[%c0_33, %c16], %83 {strides = array<i32>} : memref<8x32xf32, #tpu.memory_space<vmem>>, vector<8x8xf32>,
    %85 = vector.extract_strided_slice %34 {offsets = [0, 24], sizes = [8, 8], strides = [1, 1]} : vector<8x32xf32> to vector<8x8xf32>
    %86 = vector.extract_strided_slice %35 {offsets = [0, 24], sizes = [8, 8], strides = [1, 1]} : vector<8x32xf32> to vector<8x8xf32>
    %cst_34 = arith.constant dense<0.000000e+00> : vector<8x8xf32>
    %87 = tpu.matmul %85, %86, %cst_34 {dimension_numbers = #tpu.dot_dimension_numbers<[1], [1], [0], [0], [0, 0, 1, 0], [], []>} : vector<8x8xf32>, vector<8x8xf32>, vector<8x8xf32> -> vector<8x8xf32>
    %cst_35 = arith.constant dense<0xFF800000> : vector<8xf32>
    %88 = vector.multi_reduction <maximumf>, %87, %cst_35 [1] : vector<8x8xf32> to vector<8xf32>
    %89 = vector.shape_cast %88 : vector<8xf32> to vector<8x1xf32>
    %90 = vector.broadcast %89 : vector<8x1xf32> to vector<8x8xf32>
    %91 = arith.subf %87, %90 : vector<8x8xf32>
    %92 = math.exp %91 : vector<8x8xf32>
    %cst_36 = arith.constant dense<0.000000e+00> : vector<8xf32>
    %93 = vector.multi_reduction <add>, %92, %cst_36 [1] : vector<8x8xf32> to vector<8xf32>
    %94 = vector.shape_cast %93 : vector<8xf32> to vector<8x1xf32>
    %95 = tpu.reciprocal %94 {approx = true} : vector<8x1xf32> -> vector<8x1xf32>
    %96 = vector.broadcast %95 : vector<8x1xf32> to vector<8x8xf32>
    %97 = arith.mulf %92, %96 : vector<8x8xf32>
    %98 = vector.extract_strided_slice %36 {offsets = [0, 24], sizes = [8, 8], strides = [1, 1]} : vector<8x32xf32> to vector<8x8xf32>
    %cst_37 = arith.constant dense<0.000000e+00> : vector<8x8xf32>
    %99 = tpu.matmul %97, %98, %cst_37 {dimension_numbers = #tpu.dot_dimension_numbers<[1], [0], [0], [1], [0, 0, 1, 1], [], []>} : vector<8x8xf32>, vector<8x8xf32>, vector<8x8xf32> -> vector<8x8xf32>
    %c0_38 = arith.constant 0 : index
    %c24 = arith.constant 24 : index
    %100 = vector.load %arg14[%c0_38, %c24] : memref<8x32xf32, #tpu.memory_space<vmem>>, vector<8x8xf32>
    tpu.vector_store %arg14[%c0_38, %c24], %99 {strides = array<i32>} : memref<8x32xf32, #tpu.memory_space<vmem>>, vector<8x8xf32>,
    %c0_39 = arith.constant 0 : index
    %c0_40 = arith.constant 0 : index
    %101 = vector.load %arg14[%c0_39, %c0_40] : memref<8x32xf32, #tpu.memory_space<vmem>>, vector<8x32xf32>
    %c0_41 = arith.constant 0 : index
    %c0_42 = arith.constant 0 : index
    %102 = vector.load %arg10[%c0_41, %c0_42] : memref<32x32xf32, #tpu.memory_space<vmem>>, vector<32x32xf32>
    %cst_43 = arith.constant dense<0.000000e+00> : vector<8x32xf32>
    %103 = tpu.matmul %101, %102, %cst_43 {dimension_numbers = #tpu.dot_dimension_numbers<[1], [0], [0], [1], [0, 0, 1, 1], [], []>} : vector<8x32xf32>, vector<32x32xf32>, vector<8x32xf32> -> vector<8x32xf32>
    %c0_44 = arith.constant 0 : index
    %c0_45 = arith.constant 0 : index
    %c0_46 = arith.constant 0 : index
    %104 = vector.load %arg11[%c0_44, %c0_45, %c0_46] : memref<1x8x32xf32, #tpu.memory_space<vmem>>, vector<1x8x32xf32>
    %105 = vector.shape_cast %104 : vector<1x8x32xf32> to vector<8x32xf32>
    %106 = vector.shape_cast %103 : vector<8x32xf32> to vector<1x8x32xf32>
    tpu.vector_store %arg11[%c0_44, %c0_45, %c0_46], %106 {strides = array<i32>} : memref<1x8x32xf32, #tpu.memory_space<vmem>>, vector<1x8x32xf32>,
    return
  }
  func.func @transform_0(%arg0: i32, %arg1: i32, %arg2: i32) -> (i32, i32, i32) {
    %c1_i32 = arith.constant 1 : i32
    %0 = arith.muli %arg1, %c1_i32 : i32
    %1 = arith.addi %0, %arg2 : i32
    %c0_i32 = arith.constant 0 : i32
    %c0_i32_0 = arith.constant 0 : i32
    return %arg0, %1, %c0_i32 : i32, i32, i32
  }
  func.func @transform_1(%arg0: i32, %arg1: i32, %arg2: i32) -> (i32, i32, i32) {
    %c0_i32 = arith.constant 0 : i32
    %c0_i32_0 = arith.constant 0 : i32
    %c0_i32_1 = arith.constant 0 : i32
    return %arg0, %c0_i32, %c0_i32_0 : i32, i32, i32
  }
  func.func @transform_2(%arg0: i32, %arg1: i32, %arg2: i32) -> (i32, i32) {
    %c0_i32 = arith.constant 0 : i32
    %c0_i32_0 = arith.constant 0 : i32
    %c0_i32_1 = arith.constant 0 : i32
    return %c0_i32, %c0_i32_0 : i32, i32
  }
  func.func @transform_3(%arg0: i32, %arg1: i32, %arg2: i32) -> (i32, i32) {
    %c0_i32 = arith.constant 0 : i32
    %c0_i32_0 = arith.constant 0 : i32
    %c0_i32_1 = arith.constant 0 : i32
    return %c0_i32, %c0_i32_0 : i32, i32
  }
  func.func @transform_4(%arg0: i32, %arg1: i32, %arg2: i32) -> (i32, i32) {
    %c0_i32 = arith.constant 0 : i32
    %c0_i32_0 = arith.constant 0 : i32
    %c0_i32_1 = arith.constant 0 : i32
    return %c0_i32, %c0_i32_0 : i32, i32
  }
  func.func @transform_5(%arg0: i32, %arg1: i32, %arg2: i32) -> (i32, i32) {
    %c0_i32 = arith.constant 0 : i32
    %c0_i32_0 = arith.constant 0 : i32
    %c0_i32_1 = arith.constant 0 : i32
    return %c0_i32, %c0_i32_0 : i32, i32
  }
  func.func @transform_6(%arg0: i32, %arg1: i32, %arg2: i32) -> (i32, i32) {
    %c0_i32 = arith.constant 0 : i32
    %c0_i32_0 = arith.constant 0 : i32
    %c0_i32_1 = arith.constant 0 : i32
    return %c0_i32, %c0_i32_0 : i32, i32
  }
  func.func @transform_7(%arg0: i32, %arg1: i32, %arg2: i32) -> (i32, i32) {
    %c0_i32 = arith.constant 0 : i32
    %c0_i32_0 = arith.constant 0 : i32
    %c0_i32_1 = arith.constant 0 : i32
    return %c0_i32, %c0_i32_0 : i32, i32
  }
  func.func @transform_8(%arg0: i32, %arg1: i32, %arg2: i32) -> (i32, i32, i32) {
    %c1_i32 = arith.constant 1 : i32
    %0 = arith.muli %arg1, %c1_i32 : i32
    %1 = arith.addi %0, %arg2 : i32
    %c0_i32 = arith.constant 0 : i32
    %c0_i32_0 = arith.constant 0 : i32
    return %arg0, %1, %c0_i32 : i32, i32, i32
  }
}

</mosaic_0001>

<bundles_post_ra>
// kernel: tpu_custom_call.1
= control target key start
LH: loop header
LB: loop body
LE: loop exit
PB: predicated region body
PF: predicated region fallthrough
CT: control target
= control target key end

     0   :  { %s1857_s0 = inlined_call_operand.hbm [shape: f32[2,8,32], index: 0, kind: input, shape index: {}]   ;;  %s1858_s1 = inlined_call_operand.hbm [shape: f32[2,8,32], index: 1, kind: input, shape index: {}]   ;;  %s1859_s2 = inlined_call_operand.vmem [shape: f32[1,32], index: 2, kind: input, shape index: {}]   ;;  %s1860_s3 = inlined_call_operand.vmem [shape: f32[1,32], index: 3, kind: input, shape index: {}]   ;;  %s1861_s4 = inlined_call_operand.hbm [shape: f32[32,32], index: 4, kind: input, shape index: {}]   ;;  %s1862_s5 = inlined_call_operand.hbm [shape: f32[32,32], index: 5, kind: input, shape index: {}]   ;;  %s1863_s6 = inlined_call_operand.hbm [shape: f32[32,32], index: 6, kind: input, shape index: {}]   ;;  %s1864_s7 = inlined_call_operand.hbm [shape: f32[32,32], index: 7, kind: input, shape index: {}]   ;;  %s1865_s8 = inlined_call_operand.hbm [shape: f32[2,8,32], index: 8, kind: output, shape index: {}]  }
   0x1   :  { %1870 = sst [smem:[#allocation28_spill]] %s1861_s4 }
   0x2   :  { %1871 = sst [smem:[#allocation29_spill]] %s1862_s5 }
   0x3   :  { %1872 = sst [smem:[#allocation30_spill]] %s1863_s6 }
   0x4   :  { %1873 = sst [smem:[#allocation31_spill]] %s1864_s7 }
   0x5   :  { %13 = vsyncpa [#allocation6], 0 }
   0x6   :  { %15 = vsyncpa [#allocation6 + $0x1], 0 }
   0x7   :  { %16 = vsyncpa [#allocation9], 0 }
   0x8   :  { %18 = vsyncpa [#allocation9 + $0x1], 0 }
   0x9   :  { %19 = vsyncpa [#allocation12], 0 }
   0xa   :  { %20 = vsyncpa [#allocation15], 0 }
   0xb   :  { %21 = vsyncpa [#allocation7], 0 }
   0xc   :  { %23 = vsyncpa [#allocation7 + $0x1], 0  ;;  %s1613_s27 = smov 0   ;;  %s1615_s28 = smov 0  }
   0xd   :  { %s1617_s29 = smov 0   ;;  %s1619_s30 = smov 0  }
   0xe   :  { %s1621_s9 = smov 0   ;;  %s1623_s10 = smov 0  }
   0xf LB: > { %1874 = sst [smem:[#allocation23_spill]] %s1541_s29  ;;  %s1644_s11 = sadd.s32 4294967295, %s1553_s10   ;;  %s1553_s10 = sphi %s1623_s10, %s29_s10   ;;  %s1549_s9 = sphi %s1621_s9, %s1893_s9   ;;  %s1545_s30 = sphi %s1619_s30, %s1892_s30   ;;  %s1541_s29 = sphi %s1617_s29, %s1891_s29   ;;  %s1537_s28 = sphi %s1615_s28, %s1895_s28   ;;  %s1533_s27 = sphi %s1613_s27, %s1894_s27  }
  0x10   : > { %1875 = sst [smem:[#allocation24_spill]] %s1549_s9  ;;  %p1096_p0 = scmp.ge.s32.totalorder %s1553_s10, 1 }
  0x11   : > { %p73_p1 = scmp.eq.s32.totalorder %s1644_s11, 0  ;;  %p265_p2 = scmp.lt.s32.totalorder %s1553_s10, 3 }
  0x12   : > { %s1876_s4 = sld [smem:[#allocation28_spill]]  ;;  %s1555_s16 = smov [#allocation10]  }
  0x13   : > { %p1652_p3 = pnand %p1096_p0, %p265_p2  ;;  %s284_s17 = sshll.u32 %s1555_s16, 4  ;;  %s285_s17 = int_to_ptr.vmem [resolvable:$true] %s284_s17 }
  0x14   : > { %p1101_p6 = scmp.ge.s32.totalorder %s1553_s10, 2  ;;  %s1879_s5 = sld [smem:[#allocation29_spill]] }
  0x15   : > { %p1156_p4 = pneg %p1652_p3  ;;  %s1556_s22 = smov 128  }
  0x16   : > { %s1557_s23 = smov 8   ;;  %s1558_s24 = smov [#allocation11]  }
  0x17   : > { %p1660_p5 = pnand %p1156_p4, %p73_p1  ;;  %s298_s25 = sshll.u32 %s1558_s24, 4  ;;  %s299_s25 = int_to_ptr.vmem [resolvable:$true] %s298_s25 }
  0x18   : > { %s282_s14 = sshll.u32 %s1876_s4, 4  ;;  %s1880_s6 = sld [smem:[#allocation30_spill]]  ;;  %s283_s14 = int_to_ptr.hbm [resolvable:$true] %s282_s14 }
  0x19   : > { %1159 = dma.hbm_to_vmem [thread:$0]  (!%p1660_p5), %s283_s14, 512, %s285_s17, [#allocation9], %s1556_s22, %s1556_s22, %s1557_s23  }
  0x1a   : > { %s296_s21 = sshll.u32 %s1879_s5, 4  ;;  %s1881_s7 = sld [smem:[#allocation31_spill]]  ;;  %s297_s21 = int_to_ptr.hbm [resolvable:$true] %s296_s21 }
  0x1b   : > { %1162 = dma.hbm_to_vmem [thread:$0]  (!%p1660_p5), %s297_s21, 512, %s299_s25, [#allocation12], %s1556_s22, %s1556_s22, %s1557_s23  }
  0x1c   : > { %s1559_s17 = smov [#allocation13]   ;;  %s1560_s24 = smov [#allocation14]  }
  0x1d   : > { %s312_s20 = sshll.u32 %s1559_s17, 4  ;;  %s326_s26 = sshll.u32 %s1560_s24, 4  ;;  %s313_s20 = int_to_ptr.vmem [resolvable:$true] %s312_s20  ;;  %s327_s26 = int_to_ptr.vmem [resolvable:$true] %s326_s26 }
  0x1e   : > { %s310_s13 = sshll.u32 %s1880_s6, 4  ;;  %s1095_s21 = sadd.s32 4294967294, %s1553_s10   ;;  %s311_s13 = int_to_ptr.hbm [resolvable:$true] %s310_s13 }
  0x1f   : > { %1165 = dma.hbm_to_vmem [thread:$0]  (!%p1660_p5), %s311_s13, 512, %s313_s20, [#allocation12], %s1556_s22, %s1556_s22, %s1557_s23  }
  0x20   : > { %s324_s14 = sshll.u32 %s1881_s7, 4  ;;  %s48_s25 = sadd.s32 1, %s1549_s9  ;;  %s325_s14 = int_to_ptr.hbm [resolvable:$true] %s324_s14 }
  0x21   : > { %1168 = dma.hbm_to_vmem [thread:$0]  (!%p1660_p5), %s325_s14, 512, %s327_s26, [#allocation15], %s1556_s22, %s1556_s22, %s1557_s23  }
  0x22   : > { %p50_p7 = scmp.ge.s32.totalorder %s48_s25, 2  ;;  %s59_s12 = sadd.s32 1, %s1541_s29 }
  0x23   : > { %p66_p8 = scmp.ne.s32.totalorder %s1541_s29, %s1537_s28  ;;  %p67_p9 = scmp.eq.s32.totalorder %s1553_s10, 0 }
  0x24   : > { %s1897_s25 = smov (%p50_p7, %s48_s25), 0  ;;  %p72_p11 = scmp.ne.s32.totalorder %s1537_s28, %s1533_s27 }
  0x25   : > { %1882 = sst [smem:[#allocation25_spill]] %s1897_s25  ;;  %p1690_p10 = por %p67_p9, %p66_p8 }
  0x26   : > { %s54_s18 = ssub.s32 %s1549_s9, %s1897_s25  ;;  %p252_p12 = scmp.eq.s32.totalorder %s1644_s11, 1 }
  0x27   : > { %p57_p13 = scmp.eq.s32.totalorder %s54_s18, 0  ;;  %p1701_p0 = por %p73_p1, %p72_p11 }
  0x28   : > { %p1705_p2 = por %p252_p12, %p66_p8  ;;  %p258_p4 = scmp.eq.s32.totalorder %s1095_s21, 1 }
  0x29   : > { %s1710_s16 = scalar_select %p57_p13, %s1541_s29, %s59_s12  }
  0x2a   : > { %p1712_p5 = por %p258_p4, %p72_p11  ;;  %p1184_p7 = scmp.lt.s32.totalorder %s1553_s10, 2 }
  0x2b   : > { %1886 = sst [smem:[#allocation26_spill]] %s1710_s16  ;;  %s340_s14 = sand.u32 1, %s1541_s29  }
  0x2c   : > { %s1887_s19 = scalar_select %p1712_p5, 1, 0 }
  0x2d   : > { %s1103_s17 = sshll.u32 %s1549_s9, 3  ;;  %s1102_s20 = sshll.u32 %s340_s14, 3 }
  0x2e   : > { %1888 = sst [smem:[#allocation27_spill]] %s1887_s19  ;;  %s350_s18 = scalar_lea.hbm %s1857_s0, %s1103_s17 }
  0x2f   : > { %s352_s4 = sshll.u32 %s350_s18, 4  ;;  %s344_s5 = scalar_lea.vmem [#allocation5], %s1102_s20  ;;  %s353_s4 = int_to_ptr.hbm [resolvable:$true] %s352_s4 }
  0x30   : > { %s354_s6 = sshll.u32 %s344_s5, 4  ;;  %p1170_p8 = pnand %p1184_p7, %p1690_p10  ;;  %s355_s6 = int_to_ptr.vmem [resolvable:$true] %s354_s6 }
  0x31   : > { %s369_s7 = scalar_lea.hbm %s1858_s1, %s1103_s17  ;;  %s361_s25 = sand.u32 1, %s1553_s10  }
  0x32   : > { %s341_s16 = scalar_lea.sflag [#allocation6], %s340_s14  ;;  %s371_s9 = sshll.u32 %s369_s7, 4  ;;  %s372_s9 = int_to_ptr.hbm [resolvable:$true] %s371_s9 }
  0x33   : > { %1172 = dma.hbm_to_vmem [thread:$0]  (!%p1170_p8), %s353_s4, 128, %s355_s6, %s341_s16  }
  0x34   : > { %s365_s29 = scalar_lea.vmem [#allocation8], %s1102_s20  ;;  %s362_s24 = scalar_lea.sflag [#allocation9], %s361_s25 }
  0x35   : > { %s373_s19 = sshll.u32 %s365_s29, 4  ;;  %382 = sbr.rel (%p1652_p3) target bundleno = 1375 (0x55f), region = 52  ;;  %s374_s19 = int_to_ptr.vmem [resolvable:$true] %s373_s19 }
  0x36   : > { %1175 = dma.hbm_to_vmem [thread:$0]  (!%p1170_p8), %s372_s9, 128, %s374_s19, %s362_s24  }
  0x37   : > { %s1731_s5 = sand.u32 (!%p1652_p3), 1, %s1537_s28  }
  0x38   : > { %s1734_s13 = sshll.u32 (!%p1652_p3), %s1731_s5, 3  ;;  %s385_s4 = scalar_lea.sflag (!%p1652_p3), [#allocation6], %s1731_s5 }
  0x39   : > { %s388_s6 = scalar_lea.vmem (!%p1652_p3), [#allocation5], %s1734_s13 }
  0x3a   : > { %1508 = dma.done.wait (%p1701_p0), %s385_s4, 128  }
  0x3b   : > { %1510 = vsyncadd (%p1701_p0), %s385_s4, 4294967168  ;;  %s394_s7 = sand.u32 1, %s1644_s11   ;;  %s398_s9 = scalar_lea.vmem [#allocation8], %s1734_s13 }
  0x3c   : > { %s395_s29 = scalar_lea.sflag [#allocation9], %s394_s7 }
  0x3d   : > { %1512 = dma.done.wait (%p1701_p0), %s395_s29, 128  }
  0x3e   : > { %1514 = vsyncadd (%p1701_p0), %s395_s29, 4294967168 }
  0x3f   : > { %1516 = dma.done.wait (%p73_p1), [#allocation9], 512  }
  0x40   : > { %1518 = vsyncadd (%p73_p1), [#allocation9], 4294966784 }
  0x41   : > { %1520 = dma.done.wait (%p73_p1), [#allocation12], 1024  }
  0x42   : > { %1522 = vsyncadd (%p73_p1), [#allocation12], 4294966272 }
  0x43   : > { %1524 = dma.done.wait (%p73_p1), [#allocation15], 512  }
  0x44   : > { %1526 = vsyncadd (%p73_p1), [#allocation15], 4294966784  ;;  %vm466_vm0 = vcmask 261120   ;;  %v465_v0 = vld [vmem:[%s398_s9] sm:$0xff]  ;;  %v557_v2 = vld [vmem:[%s388_s6] sm:$0xff]  ;;  %v1561_v4 = vmov 32.0  }
  0x45   : > { %v467_v1 = vsel %vm466_vm0, %v465_v0, 0.0  ;;  %v559_v3 = vsel %vm466_vm0, %v557_v2, 0.0  ;;  %1253 = vrcp.f32 %v1561_v4  ;;  %v507_v21 = vld [vmem:[#allocation11 + $0x18] sm:$0xff]  ;;  %v506_v23 = vld [vmem:[#allocation11 + $0x10] sm:$0xff]  ;;  %v505_v25 = vld [vmem:[#allocation11 + $0x8] sm:$0xff]  ;;  %vm625_vm8 = vcmask 64512  }
  0x46   : > { %468 = vadd.xlane.f32.xlu0 %v467_v1  ;;  %v535_v22 = vld [vmem:[#allocation13 + $0x18] sm:$0xff]  ;;  %523 = vmatpush.msra.mxu0 %v507_v21  ;;  %v534_v24 = vld [vmem:[#allocation13 + $0x10] sm:$0xff]  ;;  %v533_v26 = vld [vmem:[#allocation13 + $0x8] sm:$0xff]  ;;  %s1562_s16 = smov 120   ;;  %s1563_s19 = smov 112   ;;  %vm757_vm9 = vcmask 130112  }
  0x47   : > { %548 = vmatpush.msra.mxu1 %v535_v22  ;;  %v504_v27 = vld [vmem:[#allocation11] sm:$0xff]  ;;  %v599_v29 = vld [vmem:[#allocation10 + $0x18] sm:$0xff]  ;;  %v598_v30 = vld [vmem:[#allocation10 + $0x10] sm:$0xff]  ;;  %s1564_s14 = smov 104   ;;  %s1565_s17 = smov 8   ;;  %vm828_vm10 = vcmask 195712  }
  0x48   : > { %524 = vmatpush.msra.mxu0 %v506_v23  ;;  %v532_v28 = vld [vmem:[#allocation13] sm:$0xff]  ;;  %615 = vmatpush.msra.mxu2 %v599_v29  ;;  %v597_v31 = vld [vmem:[#allocation10 + $0x8] sm:$0xff]  ;;  %s1566_s20 = smov 16   ;;  %s1567_s26 = smov 24   ;;  %vm899_vm11 = vcmask 261312  }
  0x49   : > { %549 = vmatpush.msra.mxu1 %v534_v24  ;;  %v596_v34 = vld [vmem:[#allocation10] sm:$0xff]  ;;  %v1251_v47 = vld [vmem:[%s1859_s2] ss:$0 sm:$0xff]  ;;  %s1131_s18 = sshll.u32 %s1545_s30, 3  ;;  %s456_s4 = scalar_lea.vmem [#allocation16], %s1734_s13 }
  0x4a   : > { %525 = vmatpush.msra.mxu0 %v505_v25  ;;  %616 = vmatpush.msra.mxu2 %v598_v30  ;;  %v1252_v51 = vld [vmem:[%s1860_s3] ss:$0 sm:$0xff]  ;;  %s943_s24 = scalar_lea.hbm %s1865_s8, %s1131_s18  ;;  %s945_s6 = sshll.u32 %s456_s4, 4  ;;  %s946_s6 = int_to_ptr.vmem [resolvable:$true] %s945_s6 }
  0x4b   : > { %v1254_v5 = vpop.eup %1253  ;;  %550 = vmatpush.msra.mxu1 %v533_v26  ;;  %s947_s7 = sshll.u32 %s943_s24, 4  ;;  %s931_s29 = scalar_lea.sflag [#allocation7], %s1731_s5  ;;  %s948_s7 = int_to_ptr.hbm [resolvable:$true] %s947_s7 }
  0x4c   : > { %v471_v6 = vmul.f32 32.0, %v1254_v5  ;;  %vm475_vm1 = vweird.f32 %v1254_v5  ;;  %526 = vmatpush.msra.mxu0 %v504_v27  ;;  %617 = vmatpush.msra.mxu2 %v597_v31  ;;  %s1469_s9 = sshra.s32 %s948_s7, 4  ;;  %s1475_s25 = scalar_lea.hbm %s1865_s8, 16  ;;  %s1470_s9 = int_to_ptr.hbm [resolvable:$true] %s1469_s9 }
  0x4d   : > { %551 = vmatpush.msra.mxu1 %v532_v28  ;;  %s1471_s11 = scalar_lea.hbm %s1470_s9, 8  ;;  %p1476_p10 = scmp.lt.s32.totalorder %s1470_s9, %s1865_s8 }
  0x4e   : > { %560 = vadd.xlane.f32.xlu0 %v559_v3  ;;  %v472_v7 = vsub.f32 1.0, %v471_v6  ;;  %618 = vmatpush.msra.mxu2 %v596_v34  ;;  %p1472_p1 = scmp.ne.s32.totalorder %s1470_s9, %s1471_s11  ;;  %p1477_p11 = scmp.lt.s32.totalorder %s1475_s25, %s1471_s11 }
  0x50   : > { %v473_v8 = vmul.f32 %v1254_v5, %v472_v7  ;;  %p1473_p3 = pnand %p1472_p1, %p1705_p2  ;;  %p1478_p12 = por %p1477_p11, %p1476_p10 }
  0x52   : > { %v474_v9 = vadd.f32 %v1254_v5, %v473_v8  ;;  %p1474_p9 = pneg %p1473_p3 }
  0x54   : > { %v476_v10 = vsel %vm475_vm1, %v1254_v5, %v474_v9  ;;  %p1479_p13 = pnand %p1478_p12, %p1474_p9 }
  0xb9   : > { %v469_v11 = vpop.xlane.xlu0 %468 }
  0xba   : > { %v477_v12 = vmul.f32 %v476_v10, %v469_v11 }
  0xbc   : > { %v478_v13 = vsub.f32 %v465_v0, %v477_v12 }
  0xbe   : > { %v479_v14 = vmul.f32 %v478_v13, %v478_v13 }
  0xc0   : > { %v480_v15 = vsel %vm466_vm0, %v479_v14, 0.0 }
  0xc1   : > { %481 = vadd.xlane.f32.xlu1 %v480_v15  ;;  %v561_v16 = vpop.xlane.xlu0 %560 }
  0xc2   : > { %v569_v17 = vmul.f32 %v561_v16, %v476_v10 }
  0xc4   : > { %v1763_v18 = vsub.f32 %v557_v2, %v569_v17 }
  0xc6   : > { %v571_v19 = vmul.f32 %v1763_v18, %v1763_v18 }
  0xc8   : > { %v572_v20 = vsel %vm466_vm0, %v571_v19, 0.0 }
  0xc9   : > { %573 = vadd.xlane.f32.xlu1 %v572_v20 }
 0x134   : > { %v482_v32 = vpop.xlane.xlu1 %481 }
 0x135   : > { %v483_v33 = vmul.f32 %v482_v32, %v476_v10 }
 0x137   : > { %v484_v35 = vadd.f32 1e-05, %v483_v33 }
 0x139   : > { %1255 = vrsqrt.f32 %v484_v35  ;;  %vm491_vm3 = vweird.f32 %v484_v35 }
 0x13c   : > { %v574_v36 = vpop.xlane.xlu1 %573 }
 0x13d   : > { %v575_v37 = vmul.f32 %v574_v36, %v476_v10 }
 0x13f   : > { %v1256_v38 = vpop.eup %1255  ;;  %v576_v39 = vadd.f32 1e-05, %v575_v37 }
 0x140   : > { %v486_v40 = vmul.f32 %v1256_v38, %v484_v35  ;;  %vm492_vm2 = vweird.f32 %v1256_v38 }
 0x141   : > { %1257 = vrsqrt.f32 %v576_v39  ;;  %vm493_vm4 = vmor %vm491_vm3, %vm492_vm2  ;;  %vm583_vm6 = vweird.f32 %v576_v39 }
 0x142   : > { %v487_v41 = vmul.f32 %v1256_v38, %v486_v40 }
 0x144   : > { %v488_v42 = vmul.f32 0.5, %v487_v41 }
 0x146   : > { %v489_v43 = vsub.f32 1.5, %v488_v42 }
 0x147   : > { %v1258_v44 = vpop.eup %1257 }
 0x148   : > { %v490_v45 = vmul.f32 %v1256_v38, %v489_v43  ;;  %v578_v46 = vmul.f32 %v1258_v44, %v576_v39  ;;  %vm584_vm5 = vweird.f32 %v1258_v44 }
 0x149   : > { %vm585_vm7 = vmor %vm583_vm6, %vm584_vm5 }
 0x14a   : > { %v494_v48 = vsel %vm493_vm4, %v1256_v38, %v490_v45  ;;  %v579_v49 = vmul.f32 %v1258_v44, %v578_v46 }
 0x14b   : > { %v495_v50 = vmul.f32 %v494_v48, %v478_v13 }
 0x14c   : > { %v580_v52 = vmul.f32 0.5, %v579_v49 }
 0x14d   : > { %v499_v53 = vmul.f32 %v1251_v47, %v495_v50 }
 0x14e   : > { %v581_v54 = vsub.f32 1.5, %v580_v52 }
 0x14f   : > { %v503_v55 = vadd.f32 %v1252_v51, %v499_v53 }
 0x150   : > { %v582_v56 = vmul.f32 %v1258_v44, %v581_v54 }
 0x151   : > { %1114 = vmatmul.msk.f32.vlgmr.msra.gmra.mxu0 %vm466_vm0, %v503_v55  ;;  %1115 = vmatmul.msk.f32.vlgmr.msra.gmra.mxu1 %vm466_vm0, %v503_v55 }
 0x152   : > { %v586_v57 = vsel %vm585_vm7, %v1258_v44, %v582_v56  ;;  %v905_v56 = vld [vmem:[#allocation14 + $0x18] sm:$0xff] }
 0x153   : > { %v587_v58 = vmul.f32 %v586_v57, %v1763_v18  ;;  %v904_v57 = vld [vmem:[#allocation14 + $0x10] sm:$0xff] }
 0x155   : > { %v591_v59 = vmul.f32 %v1251_v47, %v587_v58  ;;  %v903_v58 = vld [vmem:[#allocation14 + $0x8] sm:$0xff] }
 0x157   : > { %v595_v60 = vadd.f32 %v1252_v51, %v591_v59  ;;  %v902_v59 = vld [vmem:[#allocation14] sm:$0xff] }
 0x159   : > { %1116 = vmatmul.msk.f32.vlgmr.msra.gmra.mxu2 %vm466_vm0, %v595_v60 }
 0x1ce   : > { %v528_v61 = vpop.f32.mrf.mxu0  ;;  %v553_v62 = vpop.f32.mrf.mxu1 }
 0x1cf   : > { %531 = vst.msk [vmem:[#allocation2] sm:$0xff] %vm466_vm0, %v528_v61 }
 0x1d0   : > { %556 = vst.msk [vmem:[#allocation3] sm:$0xff] %vm466_vm0, %v553_v62 }
 0x1d6   : > { %v623_v63 = vld [vmem:[#allocation2] sm:$0xff] }
 0x1d7   : > { %689 = vrot.lane.b32.xlu0 %v623_v63, %s1562_s16  ;;  %1117 = vmatpush.xpose.msk.msra.mxu3 %vm625_vm8, %v623_v63  ;;  %v1782_v0 = vld [vmem:[#allocation3] sm:$0xff] }
 0x1db   : > { %681 = vmatpush.msrb.mxu3 %v1782_v0 }
 0x1dc   : > { %v620_v1 = vpop.f32.mrf.mxu2 }
 0x1dd   : > { %687 = vrot.lane.b32.xlu1 %v620_v1, %s1562_s16  ;;  %759 = vrot.lane.b32.xlu2 %v620_v1, %s1563_s19 }
 0x1de   : > { %1118 = vmatmul.msk.f32.vlgmr.msra.gmra.mxu3 %vm625_vm8, %v620_v1 }
 0x1e5   : > { %761 = vrot.lane.b32.xlu2 %v623_v63, %s1563_s19 }
 0x1ed   : > { %832 = vrot.lane.b32.xlu2 %v623_v63, %s1564_s14 }
 0x1f5   : > { %830 = vrot.lane.b32.xlu2 %v620_v1, %s1564_s14 }
 0x237   : > { %v760_v2 = vpop.permute.xlu2 %759 }
 0x23f   : > { %v762_v3 = vpop.permute.xlu2 %761 }
 0x240   : > { %1123 = vmatpush.xpose.msk.msrb.mxu2 %vm625_vm8, %v762_v3 }
 0x243   : > { %1124 = vmatmul.msk.f32.vlgmr.msrb.gmra.mxu2 %vm625_vm8, %v760_v2 }
 0x244   : > { %921 = vmatpush.msra.mxu2 %v905_v56 }
 0x246   : > { %922 = vmatpush.msra.mxu2 %v904_v57 }
 0x247   : > { %v833_v5 = vpop.permute.xlu2 %832 }
 0x248   : > { %923 = vmatpush.msra.mxu2 %v903_v58 }
 0x249   : > { %v690_v4 = vpop.permute.xlu0 %689 }
 0x24a   : > { %1120 = vmatpush.xpose.msk.msrb.mxu0 %vm625_vm8, %v690_v4  ;;  %924 = vmatpush.msra.mxu2 %v902_v59 }
 0x24e   : > { %1126 = vmatpush.xpose.msk.msra.mxu0 %vm625_vm8, %v833_v5 }
 0x24f   : > { %v688_v6 = vpop.permute.xlu1 %687  ;;  %v831_v7 = vpop.permute.xlu2 %830 }
 0x250   : > { %1121 = vmatmul.msk.f32.vlgmr.msrb.gmra.mxu0 %vm625_vm8, %v688_v6 }
 0x258   : > { %1127 = vmatmul.msk.f32.vlgmr.msra.gmra.mxu0 %vm625_vm8, %v831_v7 }
 0x261   : > { %v649_v8 = vpop.f32.mrf.mxu3 }
 0x262   : > { %v652_v9 = vsel %vm625_vm8, %v649_v8, -inf }
 0x263   : > { %653 = vmax.xlane.f32.xlu2 %v652_v9 }
 0x2c6   : > { %v784_v10 = vpop.f32.mrf.mxu2 }
 0x2c7   : > { %v787_v11 = vsel %vm625_vm8, %v784_v10, -inf }
 0x2c8   : > { %788 = vmax.xlane.f32.xlu1 %v787_v11 }
 0x2cd   : > { %v712_v12 = vpop.f32.mrf.mxu0 }
 0x2ce   : > { %v715_v13 = vsel %vm625_vm8, %v712_v12, -inf }
 0x2cf   : > { %716 = vmax.xlane.f32.xlu0 %v715_v13 }
 0x2d5   : > { %v855_v14 = vpop.f32.mrf.mxu0 }
 0x2d6   : > { %v654_v15 = vpop.xlane.xlu2 %653  ;;  %v858_v16 = vsel %vm625_vm8, %v855_v14, -inf }
 0x2d7   : > { %v655_v17 = vsub.f32 %v649_v8, %v654_v15  ;;  %859 = vmax.xlane.f32.xlu2 %v858_v16 }
 0x2d9   : > { %v656_v18 = vmul.f32 1.442695, %v655_v17 }
 0x2db   : > { %1259 = vpow2.f32 %v656_v18 }
 0x2e1   : > { %v1260_v19 = vpop.eup %1259 }
 0x2e2   : > { %v658_v20 = vsel %vm625_vm8, %v1260_v19, 0.0 }
 0x2e3   : > { %659 = vadd.xlane.f32.xlu0 %v658_v20 }
 0x33b   : > { %v789_v21 = vpop.xlane.xlu1 %788 }
 0x33c   : > { %v790_v22 = vsub.f32 %v784_v10, %v789_v21 }
 0x33e   : > { %v791_v23 = vmul.f32 1.442695, %v790_v22 }
 0x340   : > { %1261 = vpow2.f32 %v791_v23 }
 0x342   : > { %v717_v24 = vpop.xlane.xlu0 %716 }
 0x343   : > { %v718_v25 = vsub.f32 %v712_v12, %v717_v24 }
 0x345   : > { %v719_v26 = vmul.f32 1.442695, %v718_v25 }
 0x346   : > { %v1262_v27 = vpop.eup %1261 }
 0x347   : > { %1263 = vpow2.f32 %v719_v26  ;;  %v793_v28 = vsel %vm625_vm8, %v1262_v27, 0.0 }
 0x348   : > { %794 = vadd.xlane.f32.xlu1 %v793_v28 }
 0x34a   : > { %v860_v29 = vpop.xlane.xlu2 %859 }
 0x34b   : > { %v861_v30 = vsub.f32 %v855_v14, %v860_v29 }
 0x34d   : > { %v1264_v31 = vpop.eup %1263  ;;  %v862_v32 = vmul.f32 1.442695, %v861_v30 }
 0x34e   : > { %v721_v33 = vsel %vm625_vm8, %v1264_v31, 0.0 }
 0x34f   : > { %1265 = vpow2.f32 %v862_v32  ;;  %722 = vadd.xlane.f32.xlu2 %v721_v33 }
 0x355   : > { %v1266_v34 = vpop.eup %1265 }
 0x356   : > { %v660_v35 = vpop.xlane.xlu0 %659  ;;  %v864_v36 = vsel %vm625_vm8, %v1266_v34, 0.0 }
 0x357   : > { %1267 = vrcp.f32 %v660_v35  ;;  %865 = vadd.xlane.f32.xlu0 %v864_v36 }
 0x35d   : > { %v1268_v37 = vpop.eup %1267 }
 0x35e   : > { %v662_v38 = vmul.f32 %v1268_v37, %v1260_v19 }
 0x360   : > { %1119 = vmatmul.msk.f32.vlgmr.msrb.gmra.mxu3 %vm625_vm8, %v662_v38 }
 0x361   : > { %798 = vrot.lane.b32.xlu1 %v1782_v0, %s1563_s19 }
 0x367   : > { %727 = vrot.lane.b32.xlu2 %v1782_v0, %s1562_s16 }
 0x36b   : > { %869 = vrot.lane.b32.xlu0 %v1782_v0, %s1564_s14 }
 0x3bb   : > { %v795_v40 = vpop.xlane.xlu1 %794 }
 0x3c2   : > { %v723_v39 = vpop.xlane.xlu2 %722 }
 0x3c3   : > { %1269 = vrcp.f32 %v723_v39 }
 0x3c4   : > { %1271 = vrcp.f32 %v795_v40 }
 0x3c9   : > { %v1270_v41 = vpop.eup %1269 }
 0x3ca   : > { %v728_v42 = vpop.permute.xlu2 %727  ;;  %v725_v43 = vmul.f32 %v1270_v41, %v1264_v31  ;;  %v1272_v44 = vpop.eup %1271 }
 0x3cb   : > { %748 = vmatpush.msrb.mxu1 %v728_v42  ;;  %v866_v45 = vpop.xlane.xlu0 %865  ;;  %v797_v46 = vmul.f32 %v1272_v44, %v1262_v27 }
 0x3cc   : > { %1122 = vmatmul.msk.f32.vlgmr.msrb.gmra.mxu1 %vm625_vm8, %v725_v43  ;;  %1273 = vrcp.f32 %v866_v45 }
 0x3d2   : > { %v1274_v48 = vpop.eup %1273 }
 0x3d3   : > { %v799_v47 = vpop.permute.xlu1 %798  ;;  %v868_v49 = vmul.f32 %v1274_v48, %v1266_v34 }
 0x3d4   : > { %819 = vmatpush.msra.mxu3 %v799_v47 }
 0x3d5   : > { %1125 = vmatmul.msk.f32.vlgmr.msra.gmra.mxu3 %vm625_vm8, %v797_v46 }
 0x3dd   : > { %v870_v50 = vpop.permute.xlu0 %869 }
 0x3de   : > { %890 = vmatpush.msra.mxu1 %v870_v50 }
 0x3df   : > { %1128 = vmatmul.msk.f32.vlgmr.msra.gmra.mxu1 %vm625_vm8, %v868_v49 }
 0x3e3   : > { %v683_v51 = vpop.f32.mrf.mxu3 }
 0x3e4   : > { %686 = vst.msk [vmem:[#allocation4] sm:$0xff] %vm625_vm8, %v683_v51 }
 0x449   : > { %v750_v52 = vpop.f32.mrf.mxu1 }
 0x44a   : > { %754 = vrot.lane.b32.xlu2 %v750_v52, %s1565_s17 }
 0x458   : > { %v821_v53 = vpop.f32.mrf.mxu3 }
 0x459   : > { %825 = vrot.lane.b32.xlu0 %v821_v53, %s1566_s20 }
 0x45c   : > { %v892_v54 = vpop.f32.mrf.mxu1 }
 0x45d   : > { %896 = vrot.lane.b32.xlu1 %v892_v54, %s1567_s26 }
 0x4a4   : > { %v755_v55 = vpop.permute.xlu2 %754 }
 0x4a5   : > { %758 = vst.msk [vmem:[#allocation4] sm:$0xff] %vm757_vm9, %v755_v55 }
 0x4cb   : > { %v826_v60 = vpop.permute.xlu0 %825 }
 0x4cc   : > { %829 = vst.msk [vmem:[#allocation4] sm:$0xff] %vm828_vm10, %v826_v60 }
 0x4cf   : > { %v897_v61 = vpop.permute.xlu1 %896 }
 0x4d0   : > { %900 = vst.msk [vmem:[#allocation4] sm:$0xff] %vm899_vm11, %v897_v61 }
 0x4d7   : > { %v901_v62 = vld [vmem:[#allocation4] sm:$0xff] }
 0x4d8   : > { %1129 = vmatmul.msk.f32.vlgmr.msra.gmra.mxu2 %vm466_vm0, %v901_v62 }
 0x55b   : > { %v926_v63 = vpop.f32.mrf.mxu2 }
 0x55c   : > { %929 = vst.msk [vmem:[%s456_s4] sm:$0xff] %vm466_vm0, %v926_v63 }
 0x55d   : > { %1482 = shalt.err (!%p1479_p13)
}
 0x55e   : > { %1154 = dma.vmem_to_hbm [thread:$0]  (%p1705_p2), %s946_s6, 128, %s948_s7, %s931_s29  }
 0x55f PF: > { %s959_s16 = sand.u32 1, %s1533_s27   ;;  %p1177_p0 = pnand %p1101_p6, %p1712_p5 }
 0x560   : > { %s960_s19 = scalar_lea.sflag [#allocation7], %s959_s16 }
 0x561   : > { %p1178_p4 = pneg %p1177_p0 }
 0x563   : > { %1528 = dma.done.wait (%p1178_p4), %s960_s19, 128  }
 0x564   : > { %1530 = vsyncadd (%p1178_p4), %s960_s19, 4294967168  ;;  %s29_s10 = sadd.s32 1, %s1553_s10   ;;  %s1890_s14 = sld [smem:[#allocation23_spill]] }
 0x565   : > { %p26_p7 = scmp.ge.s32.totalorder %s29_s10, 4   ;;  %s1891_s29 = sld [smem:[#allocation26_spill]] }
 0x566   : > { %s1892_s30 = sld [smem:[#allocation24_spill]]  ;;  %s1894_s27 = smov %s1537_s28 }
 0x567   : > { %s1893_s9 = sld [smem:[#allocation25_spill]]  ;;  %28 = sbr.rel (!%p26_p7) target bundleno = 15 (0xf), region = 130 }
 0x56a   : > { %s1895_s28 = smov %s1890_s14 }
 0x56c   :  { %966 = vsyncpa [#allocation6], 1 }
 0x56d   :  { %968 = vsyncpa [#allocation6 + $0x1], 1 }
 0x56e   :  { %969 = vsyncpa [#allocation9], 1 }
 0x56f   :  { %971 = vsyncpa [#allocation9 + $0x1], 1 }
 0x570   :  { %972 = vsyncpa [#allocation12], 1 }
 0x571   :  { %973 = vsyncpa [#allocation15], 1 }
 0x572   :  { %974 = vsyncpa [#allocation7], 1 }
 0x573   :  { %976 = vsyncpa [#allocation7 + $0x1], 1 }

// kernel: tpu_custom_call.1
= control target key start
LH: loop header
LB: loop body
LE: loop exit
PB: predicated region body
PF: predicated region fallthrough
CT: control target
= control target key end

     0   :  { %s1857_s0 = inlined_call_operand.hbm [shape: f32[2,8,32], index: 0, kind: input, shape index: {}]   ;;  %s1858_s1 = inlined_call_operand.hbm [shape: f32[2,8,32], index: 1, kind: input, shape index: {}]   ;;  %s1859_s2 = inlined_call_operand.vmem [shape: f32[1,32], index: 2, kind: input, shape index: {}]   ;;  %s1860_s3 = inlined_call_operand.vmem [shape: f32[1,32], index: 3, kind: input, shape index: {}]   ;;  %s1861_s4 = inlined_call_operand.hbm [shape: f32[32,32], index: 4, kind: input, shape index: {}]   ;;  %s1862_s5 = inlined_call_operand.hbm [shape: f32[32,32], index: 5, kind: input, shape index: {}]   ;;  %s1863_s6 = inlined_call_operand.hbm [shape: f32[32,32], index: 6, kind: input, shape index: {}]   ;;  %s1864_s7 = inlined_call_operand.hbm [shape: f32[32,32], index: 7, kind: input, shape index: {}]   ;;  %s1865_s8 = inlined_call_operand.hbm [shape: f32[2,8,32], index: 8, kind: output, shape index: {}]  }
   0x1   :  { %1870 = sst [smem:[#allocation28_spill]] %s1861_s4 }
   0x2   :  { %1871 = sst [smem:[#allocation29_spill]] %s1862_s5 }
   0x3   :  { %1872 = sst [smem:[#allocation30_spill]] %s1863_s6 }
   0x4   :  { %1873 = sst [smem:[#allocation31_spill]] %s1864_s7 }
   0x5   :  { %13 = vsyncpa [#allocation6], 0 }
   0x6   :  { %15 = vsyncpa [#allocation6 + $0x1], 0 }
   0x7   :  { %16 = vsyncpa [#allocation9], 0 }
   0x8   :  { %18 = vsyncpa [#allocation9 + $0x1], 0 }
   0x9   :  { %19 = vsyncpa [#allocation12], 0 }
   0xa   :  { %20 = vsyncpa [#allocation15], 0 }
   0xb   :  { %21 = vsyncpa [#allocation7], 0 }
   0xc   :  { %23 = vsyncpa [#allocation7 + $0x1], 0  ;;  %s1613_s27 = smov 0   ;;  %s1615_s28 = smov 0  }
   0xd   :  { %s1617_s29 = smov 0   ;;  %s1619_s30 = smov 0  }
   0xe   :  { %s1621_s9 = smov 0   ;;  %s1623_s10 = smov 0  }
   0xf LB: > { %1874 = sst [smem:[#allocation23_spill]] %s1541_s29  ;;  %s1644_s11 = sadd.s32 4294967295, %s1553_s10   ;;  %s1553_s10 = sphi %s1623_s10, %s29_s10   ;;  %s1549_s9 = sphi %s1621_s9, %s1893_s9   ;;  %s1545_s30 = sphi %s1619_s30, %s1892_s30   ;;  %s1541_s29 = sphi %s1617_s29, %s1891_s29   ;;  %s1537_s28 = sphi %s1615_s28, %s1895_s28   ;;  %s1533_s27 = sphi %s1613_s27, %s1894_s27  }
  0x10   : > { %1875 = sst [smem:[#allocation24_spill]] %s1549_s9  ;;  %p1096_p0 = scmp.ge.s32.totalorder %s1553_s10, 1 }
  0x11   : > { %p73_p1 = scmp.eq.s32.totalorder %s1644_s11, 0  ;;  %p265_p2 = scmp.lt.s32.totalorder %s1553_s10, 3 }
  0x12   : > { %s1876_s4 = sld [smem:[#allocation28_spill]]  ;;  %s1555_s16 = smov [#allocation10]  }
  0x13   : > { %p1652_p3 = pnand %p1096_p0, %p265_p2  ;;  %s284_s17 = sshll.u32 %s1555_s16, 4  ;;  %s285_s17 = int_to_ptr.vmem [resolvable:$true] %s284_s17 }
  0x14   : > { %p1101_p6 = scmp.ge.s32.totalorder %s1553_s10, 2  ;;  %s1879_s5 = sld [smem:[#allocation29_spill]] }
  0x15   : > { %p1156_p4 = pneg %p1652_p3  ;;  %s1556_s22 = smov 128  }
  0x16   : > { %s1557_s23 = smov 8   ;;  %s1558_s24 = smov [#allocation11]  }
  0x17   : > { %p1660_p5 = pnand %p1156_p4, %p73_p1  ;;  %s298_s25 = sshll.u32 %s1558_s24, 4  ;;  %s299_s25 = int_to_ptr.vmem [resolvable:$true] %s298_s25 }
  0x18   : > { %s282_s14 = sshll.u32 %s1876_s4, 4  ;;  %s1880_s6 = sld [smem:[#allocation30_spill]]  ;;  %s283_s14 = int_to_ptr.hbm [resolvable:$true] %s282_s14 }
  0x19   : > { %1159 = dma.hbm_to_vmem [thread:$0]  (!%p1660_p5), %s283_s14, 512, %s285_s17, [#allocation9], %s1556_s22, %s1556_s22, %s1557_s23  }
  0x1a   : > { %s296_s21 = sshll.u32 %s1879_s5, 4  ;;  %s1881_s7 = sld [smem:[#allocation31_spill]]  ;;  %s297_s21 = int_to_ptr.hbm [resolvable:$true] %s296_s21 }
  0x1b   : > { %1162 = dma.hbm_to_vmem [thread:$0]  (!%p1660_p5), %s297_s21, 512, %s299_s25, [#allocation12], %s1556_s22, %s1556_s22, %s1557_s23  }
  0x1c   : > { %s1559_s17 = smov [#allocation13]   ;;  %s1560_s24 = smov [#allocation14]  }
  0x1d   : > { %s312_s20 = sshll.u32 %s1559_s17, 4  ;;  %s326_s26 = sshll.u32 %s1560_s24, 4  ;;  %s313_s20 = int_to_ptr.vmem [resolvable:$true] %s312_s20  ;;  %s327_s26 = int_to_ptr.vmem [resolvable:$true] %s326_s26 }
  0x1e   : > { %s310_s13 = sshll.u32 %s1880_s6, 4  ;;  %s1095_s21 = sadd.s32 4294967294, %s1553_s10   ;;  %s311_s13 = int_to_ptr.hbm [resolvable:$true] %s310_s13 }
  0x1f   : > { %1165 = dma.hbm_to_vmem [thread:$0]  (!%p1660_p5), %s311_s13, 512, %s313_s20, [#allocation12], %s1556_s22, %s1556_s22, %s1557_s23  }
  0x20   : > { %s324_s14 = sshll.u32 %s1881_s7, 4  ;;  %s48_s25 = sadd.s32 1, %s1549_s9  ;;  %s325_s14 = int_to_ptr.hbm [resolvable:$true] %s324_s14 }
  0x21   : > { %1168 = dma.hbm_to_vmem [thread:$0]  (!%p1660_p5), %s325_s14, 512, %s327_s26, [#allocation15], %s1556_s22, %s1556_s22, %s1557_s23  }
  0x22   : > { %p50_p7 = scmp.ge.s32.totalorder %s48_s25, 2  ;;  %s59_s12 = sadd.s32 1, %s1541_s29 }
  0x23   : > { %p66_p8 = scmp.ne.s32.totalorder %s1541_s29, %s1537_s28  ;;  %p67_p9 = scmp.eq.s32.totalorder %s1553_s10, 0 }
  0x24   : > { %s1897_s25 = smov (%p50_p7, %s48_s25), 0  ;;  %p72_p11 = scmp.ne.s32.totalorder %s1537_s28, %s1533_s27 }
  0x25   : > { %1882 = sst [smem:[#allocation25_spill]] %s1897_s25  ;;  %p1690_p10 = por %p67_p9, %p66_p8 }
  0x26   : > { %s54_s18 = ssub.s32 %s1549_s9, %s1897_s25  ;;  %p252_p12 = scmp.eq.s32.totalorder %s1644_s11, 1 }
  0x27   : > { %p57_p13 = scmp.eq.s32.totalorder %s54_s18, 0  ;;  %p1701_p0 = por %p73_p1, %p72_p11 }
  0x28   : > { %p1705_p2 = por %p252_p12, %p66_p8  ;;  %p258_p4 = scmp.eq.s32.totalorder %s1095_s21, 1 }
  0x29   : > { %s1710_s16 = scalar_select %p57_p13, %s1541_s29, %s59_s12  }
  0x2a   : > { %p1712_p5 = por %p258_p4, %p72_p11  ;;  %p1184_p7 = scmp.lt.s32.totalorder %s1553_s10, 2 }
  0x2b   : > { %1886 = sst [smem:[#allocation26_spill]] %s1710_s16  ;;  %s340_s14 = sand.u32 1, %s1541_s29  }
  0x2c   : > { %s1887_s19 = scalar_select %p1712_p5, 1, 0 }
  0x2d   : > { %s1103_s17 = sshll.u32 %s1549_s9, 3  ;;  %s1102_s20 = sshll.u32 %s340_s14, 3 }
  0x2e   : > { %1888 = sst [smem:[#allocation27_spill]] %s1887_s19  ;;  %s350_s18 = scalar_lea.hbm %s1857_s0, %s1103_s17 }
  0x2f   : > { %s352_s4 = sshll.u32 %s350_s18, 4  ;;  %s344_s5 = scalar_lea.vmem [#allocation5], %s1102_s20  ;;  %s353_s4 = int_to_ptr.hbm [resolvable:$true] %s352_s4 }
  0x30   : > { %s354_s6 = sshll.u32 %s344_s5, 4  ;;  %p1170_p8 = pnand %p1184_p7, %p1690_p10  ;;  %s355_s6 = int_to_ptr.vmem [resolvable:$true] %s354_s6 }
  0x31   : > { %s369_s7 = scalar_lea.hbm %s1858_s1, %s1103_s17  ;;  %s361_s25 = sand.u32 1, %s1553_s10  }
  0x32   : > { %s341_s16 = scalar_lea.sflag [#allocation6], %s340_s14  ;;  %s371_s9 = sshll.u32 %s369_s7, 4  ;;  %s372_s9 = int_to_ptr.hbm [resolvable:$true] %s371_s9 }
  0x33   : > { %1172 = dma.hbm_to_vmem [thread:$0]  (!%p1170_p8), %s353_s4, 128, %s355_s6, %s341_s16  }
  0x34   : > { %s365_s29 = scalar_lea.vmem [#allocation8], %s1102_s20  ;;  %s362_s24 = scalar_lea.sflag [#allocation9], %s361_s25 }
  0x35   : > { %s373_s19 = sshll.u32 %s365_s29, 4  ;;  %382 = sbr.rel (%p1652_p3) target bundleno = 1375 (0x55f), region = 52  ;;  %s374_s19 = int_to_ptr.vmem [resolvable:$true] %s373_s19 }
  0x36   : > { %1175 = dma.hbm_to_vmem [thread:$0]  (!%p1170_p8), %s372_s9, 128, %s374_s19, %s362_s24  }
  0x37   : > { %s1731_s5 = sand.u32 (!%p1652_p3), 1, %s1537_s28  }
  0x38   : > { %s1734_s13 = sshll.u32 (!%p1652_p3), %s1731_s5, 3  ;;  %s385_s4 = scalar_lea.sflag (!%p1652_p3), [#allocation6], %s1731_s5 }
  0x39   : > { %s388_s6 = scalar_lea.vmem (!%p1652_p3), [#allocation5], %s1734_s13 }
  0x3a   : > { %1508 = dma.done.wait (%p1701_p0), %s385_s4, 128  }
  0x3b   : > { %1510 = vsyncadd (%p1701_p0), %s385_s4, 4294967168  ;;  %s394_s7 = sand.u32 1, %s1644_s11   ;;  %s398_s9 = scalar_lea.vmem [#allocation8], %s1734_s13 }
  0x3c   : > { %s395_s29 = scalar_lea.sflag [#allocation9], %s394_s7 }
  0x3d   : > { %1512 = dma.done.wait (%p1701_p0), %s395_s29, 128  }
  0x3e   : > { %1514 = vsyncadd (%p1701_p0), %s395_s29, 4294967168 }
  0x3f   : > { %1516 = dma.done.wait (%p73_p1), [#allocation9], 512  }
  0x40   : > { %1518 = vsyncadd (%p73_p1), [#allocation9], 4294966784 }
  0x41   : > { %1520 = dma.done.wait (%p73_p1), [#allocation12], 1024  }
  0x42   : > { %1522 = vsyncadd (%p73_p1), [#allocation12], 4294966272 }
  0x43   : > { %1524 = dma.done.wait (%p73_p1), [#allocation15], 512  }
  0x44   : > { %1526 = vsyncadd (%p73_p1), [#allocation15], 4294966784  ;;  %vm466_vm0 = vcmask 261120   ;;  %v465_v0 = vld [vmem:[%s398_s9] sm:$0xff]  ;;  %v557_v2 = vld [vmem:[%s388_s6] sm:$0xff]  ;;  %v1561_v4 = vmov 32.0  }
  0x45   : > { %v467_v1 = vsel %vm466_vm0, %v465_v0, 0.0  ;;  %v559_v3 = vsel %vm466_vm0, %v557_v2, 0.0  ;;  %1253 = vrcp.f32 %v1561_v4  ;;  %v507_v21 = vld [vmem:[#allocation11 + $0x18] sm:$0xff]  ;;  %v506_v23 = vld [vmem:[#allocation11 + $0x10] sm:$0xff]  ;;  %v505_v25 = vld [vmem:[#allocation11 + $0x8] sm:$0xff]  ;;  %vm625_vm8 = vcmask 64512  }
  0x46   : > { %468 = vadd.xlane.f32.xlu0 %v467_v1  ;;  %v535_v22 = vld [vmem:[#allocation13 + $0x18] sm:$0xff]  ;;  %523 = vmatpush.msra.mxu0 %v507_v21  ;;  %v534_v24 = vld [vmem:[#allocation13 + $0x10] sm:$0xff]  ;;  %v533_v26 = vld [vmem:[#allocation13 + $0x8] sm:$0xff]  ;;  %s1562_s16 = smov 120   ;;  %s1563_s19 = smov 112   ;;  %vm757_vm9 = vcmask 130112  }
  0x47   : > { %548 = vmatpush.msra.mxu1 %v535_v22  ;;  %v504_v27 = vld [vmem:[#allocation11] sm:$0xff]  ;;  %v599_v29 = vld [vmem:[#allocation10 + $0x18] sm:$0xff]  ;;  %v598_v30 = vld [vmem:[#allocation10 + $0x10] sm:$0xff]  ;;  %s1564_s14 = smov 104   ;;  %s1565_s17 = smov 8   ;;  %vm828_vm10 = vcmask 195712  }
  0x48   : > { %524 = vmatpush.msra.mxu0 %v506_v23  ;;  %v532_v28 = vld [vmem:[#allocation13] sm:$0xff]  ;;  %615 = vmatpush.msra.mxu2 %v599_v29  ;;  %v597_v31 = vld [vmem:[#allocation10 + $0x8] sm:$0xff]  ;;  %s1566_s20 = smov 16   ;;  %s1567_s26 = smov 24   ;;  %vm899_vm11 = vcmask 261312  }
  0x49   : > { %549 = vmatpush.msra.mxu1 %v534_v24  ;;  %v596_v34 = vld [vmem:[#allocation10] sm:$0xff]  ;;  %v1251_v47 = vld [vmem:[%s1859_s2] ss:$0 sm:$0xff]  ;;  %s1131_s18 = sshll.u32 %s1545_s30, 3  ;;  %s456_s4 = scalar_lea.vmem [#allocation16], %s1734_s13 }
  0x4a   : > { %525 = vmatpush.msra.mxu0 %v505_v25  ;;  %616 = vmatpush.msra.mxu2 %v598_v30  ;;  %v1252_v51 = vld [vmem:[%s1860_s3] ss:$0 sm:$0xff]  ;;  %s943_s24 = scalar_lea.hbm %s1865_s8, %s1131_s18  ;;  %s945_s6 = sshll.u32 %s456_s4, 4  ;;  %s946_s6 = int_to_ptr.vmem [resolvable:$true] %s945_s6 }
  0x4b   : > { %v1254_v5 = vpop.eup %1253  ;;  %550 = vmatpush.msra.mxu1 %v533_v26  ;;  %s947_s7 = sshll.u32 %s943_s24, 4  ;;  %s931_s29 = scalar_lea.sflag [#allocation7], %s1731_s5  ;;  %s948_s7 = int_to_ptr.hbm [resolvable:$true] %s947_s7 }
  0x4c   : > { %v471_v6 = vmul.f32 32.0, %v1254_v5  ;;  %vm475_vm1 = vweird.f32 %v1254_v5  ;;  %526 = vmatpush.msra.mxu0 %v504_v27  ;;  %617 = vmatpush.msra.mxu2 %v597_v31  ;;  %s1469_s9 = sshra.s32 %s948_s7, 4  ;;  %s1475_s25 = scalar_lea.hbm %s1865_s8, 16  ;;  %s1470_s9 = int_to_ptr.hbm [resolvable:$true] %s1469_s9 }
  0x4d   : > { %551 = vmatpush.msra.mxu1 %v532_v28  ;;  %s1471_s11 = scalar_lea.hbm %s1470_s9, 8  ;;  %p1476_p10 = scmp.lt.s32.totalorder %s1470_s9, %s1865_s8 }
  0x4e   : > { %560 = vadd.xlane.f32.xlu0 %v559_v3  ;;  %v472_v7 = vsub.f32 1.0, %v471_v6  ;;  %618 = vmatpush.msra.mxu2 %v596_v34  ;;  %p1472_p1 = scmp.ne.s32.totalorder %s1470_s9, %s1471_s11  ;;  %p1477_p11 = scmp.lt.s32.totalorder %s1475_s25, %s1471_s11 }
  0x50   : > { %v473_v8 = vmul.f32 %v1254_v5, %v472_v7  ;;  %p1473_p3 = pnand %p1472_p1, %p1705_p2  ;;  %p1478_p12 = por %p1477_p11, %p1476_p10 }
  0x52   : > { %v474_v9 = vadd.f32 %v1254_v5, %v473_v8  ;;  %p1474_p9 = pneg %p1473_p3 }
  0x54   : > { %v476_v10 = vsel %vm475_vm1, %v1254_v5, %v474_v9  ;;  %p1479_p13 = pnand %p1478_p12, %p1474_p9 }
  0xb9   : > { %v469_v11 = vpop.xlane.xlu0 %468 }
  0xba   : > { %v477_v12 = vmul.f32 %v476_v10, %v469_v11 }
  0xbc   : > { %v478_v13 = vsub.f32 %v465_v0, %v477_v12 }
  0xbe   : > { %v479_v14 = vmul.f32 %v478_v13, %v478_v13 }
  0xc0   : > { %v480_v15 = vsel %vm466_vm0, %v479_v14, 0.0 }
  0xc1   : > { %481 = vadd.xlane.f32.xlu1 %v480_v15  ;;  %v561_v16 = vpop.xlane.xlu0 %560 }
  0xc2   : > { %v569_v17 = vmul.f32 %v561_v16, %v476_v10 }
  0xc4   : > { %v1763_v18 = vsub.f32 %v557_v2, %v569_v17 }
  0xc6   : > { %v571_v19 = vmul.f32 %v1763_v18, %v1763_v18 }
  0xc8   : > { %v572_v20 = vsel %vm466_vm0, %v571_v19, 0.0 }
  0xc9   : > { %573 = vadd.xlane.f32.xlu1 %v572_v20 }
 0x134   : > { %v482_v32 = vpop.xlane.xlu1 %481 }
 0x135   : > { %v483_v33 = vmul.f32 %v482_v32, %v476_v10 }
 0x137   : > { %v484_v35 = vadd.f32 1e-05, %v483_v33 }
 0x139   : > { %1255 = vrsqrt.f32 %v484_v35  ;;  %vm491_vm3 = vweird.f32 %v484_v35 }
 0x13c   : > { %v574_v36 = vpop.xlane.xlu1 %573 }
 0x13d   : > { %v575_v37 = vmul.f32 %v574_v36, %v476_v10 }
 0x13f   : > { %v1256_v38 = vpop.eup %1255  ;;  %v576_v39 = vadd.f32 1e-05, %v575_v37 }
 0x140   : > { %v486_v40 = vmul.f32 %v1256_v38, %v484_v35  ;;  %vm492_vm2 = vweird.f32 %v1256_v38 }
 0x141   : > { %1257 = vrsqrt.f32 %v576_v39  ;;  %vm493_vm4 = vmor %vm491_vm3, %vm492_vm2  ;;  %vm583_vm6 = vweird.f32 %v576_v39 }
 0x142   : > { %v487_v41 = vmul.f32 %v1256_v38, %v486_v40 }
 0x144   : > { %v488_v42 = vmul.f32 0.5, %v487_v41 }
 0x146   : > { %v489_v43 = vsub.f32 1.5, %v488_v42 }
 0x147   : > { %v1258_v44 = vpop.eup %1257 }
 0x148   : > { %v490_v45 = vmul.f32 %v1256_v38, %v489_v43  ;;  %v578_v46 = vmul.f32 %v1258_v44, %v576_v39  ;;  %vm584_vm5 = vweird.f32 %v1258_v44 }
 0x149   : > { %vm585_vm7 = vmor %vm583_vm6, %vm584_vm5 }
 0x14a   : > { %v494_v48 = vsel %vm493_vm4, %v1256_v38, %v490_v45  ;;  %v579_v49 = vmul.f32 %v1258_v44, %v578_v46 }
 0x14b   : > { %v495_v50 = vmul.f32 %v494_v48, %v478_v13 }
 0x14c   : > { %v580_v52 = vmul.f32 0.5, %v579_v49 }
 0x14d   : > { %v499_v53 = vmul.f32 %v1251_v47, %v495_v50 }
 0x14e   : > { %v581_v54 = vsub.f32 1.5, %v580_v52 }
 0x14f   : > { %v503_v55 = vadd.f32 %v1252_v51, %v499_v53 }
 0x150   : > { %v582_v56 = vmul.f32 %v1258_v44, %v581_v54 }
 0x151   : > { %1114 = vmatmul.msk.f32.vlgmr.msra.gmra.mxu0 %vm466_vm0, %v503_v55  ;;  %1115 = vmatmul.msk.f32.vlgmr.msra.gmra.mxu1 %vm466_vm0, %v503_v55 }
 0x152   : > { %v586_v57 = vsel %vm585_vm7, %v1258_v44, %v582_v56  ;;  %v905_v56 = vld [vmem:[#allocation14 + $0x18] sm:$0xff] }
 0x153   : > { %v587_v58 = vmul.f32 %v586_v57, %v1763_v18  ;;  %v904_v57 = vld [vmem:[#allocation14 + $0x10] sm:$0xff] }
 0x155   : > { %v591_v59 = vmul.f32 %v1251_v47, %v587_v58  ;;  %v903_v58 = vld [vmem:[#allocation14 + $0x8] sm:$0xff] }
 0x157   : > { %v595_v60 = vadd.f32 %v1252_v51, %v591_v59  ;;  %v902_v59 = vld [vmem:[#allocation14] sm:$0xff] }
 0x159   : > { %1116 = vmatmul.msk.f32.vlgmr.msra.gmra.mxu2 %vm466_vm0, %v595_v60 }
 0x1ce   : > { %v528_v61 = vpop.f32.mrf.mxu0  ;;  %v553_v62 = vpop.f32.mrf.mxu1 }
 0x1cf   : > { %531 = vst.msk [vmem:[#allocation2] sm:$0xff] %vm466_vm0, %v528_v61 }
 0x1d0   : > { %556 = vst.msk [vmem:[#allocation3] sm:$0xff] %vm466_vm0, %v553_v62 }
 0x1d6   : > { %v623_v63 = vld [vmem:[#allocation2] sm:$0xff] }
 0x1d7   : > { %689 = vrot.lane.b32.xlu0 %v623_v63, %s1562_s16  ;;  %1117 = vmatpush.xpose.msk.msra.mxu3 %vm625_vm8, %v623_v63  ;;  %v1782_v0 = vld [vmem:[#allocation3] sm:$0xff] }
 0x1db   : > { %681 = vmatpush.msrb.mxu3 %v1782_v0 }
 0x1dc   : > { %v620_v1 = vpop.f32.mrf.mxu2 }
 0x1dd   : > { %687 = vrot.lane.b32.xlu1 %v620_v1, %s1562_s16  ;;  %759 = vrot.lane.b32.xlu2 %v620_v1, %s1563_s19 }
 0x1de   : > { %1118 = vmatmul.msk.f32.vlgmr.msra.gmra.mxu3 %vm625_vm8, %v620_v1 }
 0x1e5   : > { %761 = vrot.lane.b32.xlu2 %v623_v63, %s1563_s19 }
 0x1ed   : > { %832 = vrot.lane.b32.xlu2 %v623_v63, %s1564_s14 }
 0x1f5   : > { %830 = vrot.lane.b32.xlu2 %v620_v1, %s1564_s14 }
 0x237   : > { %v760_v2 = vpop.permute.xlu2 %759 }
 0x23f   : > { %v762_v3 = vpop.permute.xlu2 %761 }
 0x240   : > { %1123 = vmatpush.xpose.msk.msrb.mxu2 %vm625_vm8, %v762_v3 }
 0x243   : > { %1124 = vmatmul.msk.f32.vlgmr.msrb.gmra.mxu2 %vm625_vm8, %v760_v2 }
 0x244   : > { %921 = vmatpush.msra.mxu2 %v905_v56 }
 0x246   : > { %922 = vmatpush.msra.mxu2 %v904_v57 }
 0x247   : > { %v833_v5 = vpop.permute.xlu2 %832 }
 0x248   : > { %923 = vmatpush.msra.mxu2 %v903_v58 }
 0x249   : > { %v690_v4 = vpop.permute.xlu0 %689 }
 0x24a   : > { %1120 = vmatpush.xpose.msk.msrb.mxu0 %vm625_vm8, %v690_v4  ;;  %924 = vmatpush.msra.mxu2 %v902_v59 }
 0x24e   : > { %1126 = vmatpush.xpose.msk.msra.mxu0 %vm625_vm8, %v833_v5 }
 0x24f   : > { %v688_v6 = vpop.permute.xlu1 %687  ;;  %v831_v7 = vpop.permute.xlu2 %830 }
 0x250   : > { %1121 = vmatmul.msk.f32.vlgmr.msrb.gmra.mxu0 %vm625_vm8, %v688_v6 }
 0x258   : > { %1127 = vmatmul.msk.f32.vlgmr.msra.gmra.mxu0 %vm625_vm8, %v831_v7 }
 0x261   : > { %v649_v8 = vpop.f32.mrf.mxu3 }
 0x262   : > { %v652_v9 = vsel %vm625_vm8, %v649_v8, -inf }
 0x263   : > { %653 = vmax.xlane.f32.xlu2 %v652_v9 }
 0x2c6   : > { %v784_v10 = vpop.f32.mrf.mxu2 }
 0x2c7   : > { %v787_v11 = vsel %vm625_vm8, %v784_v10, -inf }
 0x2c8   : > { %788 = vmax.xlane.f32.xlu1 %v787_v11 }
 0x2cd   : > { %v712_v12 = vpop.f32.mrf.mxu0 }
 0x2ce   : > { %v715_v13 = vsel %vm625_vm8, %v712_v12, -inf }
 0x2cf   : > { %716 = vmax.xlane.f32.xlu0 %v715_v13 }
 0x2d5   : > { %v855_v14 = vpop.f32.mrf.mxu0 }
 0x2d6   : > { %v654_v15 = vpop.xlane.xlu2 %653  ;;  %v858_v16 = vsel %vm625_vm8, %v855_v14, -inf }
 0x2d7   : > { %v655_v17 = vsub.f32 %v649_v8, %v654_v15  ;;  %859 = vmax.xlane.f32.xlu2 %v858_v16 }
 0x2d9   : > { %v656_v18 = vmul.f32 1.442695, %v655_v17 }
 0x2db   : > { %1259 = vpow2.f32 %v656_v18 }
 0x2e1   : > { %v1260_v19 = vpop.eup %1259 }
 0x2e2   : > { %v658_v20 = vsel %vm625_vm8, %v1260_v19, 0.0 }
 0x2e3   : > { %659 = vadd.xlane.f32.xlu0 %v658_v20 }
 0x33b   : > { %v789_v21 = vpop.xlane.xlu1 %788 }
 0x33c   : > { %v790_v22 = vsub.f32 %v784_v10, %v789_v21 }
 0x33e   : > { %v791_v23 = vmul.f32 1.442695, %v790_v22 }
 0x340   : > { %1261 = vpow2.f32 %v791_v23 }
 0x342   : > { %v717_v24 = vpop.xlane.xlu0 %716 }
 0x343   : > { %v718_v25 = vsub.f32 %v712_v12, %v717_v24 }
 0x345   : > { %v719_v26 = vmul.f32 1.442695, %v718_v25 }
 0x346   : > { %v1262_v27 = vpop.eup %1261 }
 0x347   : > { %1263 = vpow2.f32 %v719_v26  ;;  %v793_v28 = vsel %vm625_vm8, %v1262_v27, 0.0 }
 0x348   : > { %794 = vadd.xlane.f32.xlu1 %v793_v28 }
 0x34a   : > { %v860_v29 = vpop.xlane.xlu2 %859 }
 0x34b   : > { %v861_v30 = vsub.f32 %v855_v14, %v860_v29 }
 0x34d   : > { %v1264_v31 = vpop.eup %1263  ;;  %v862_v32 = vmul.f32 1.442695, %v861_v30 }
 0x34e   : > { %v721_v33 = vsel %vm625_vm8, %v1264_v31, 0.0 }
 0x34f   : > { %1265 = vpow2.f32 %v862_v32  ;;  %722 = vadd.xlane.f32.xlu2 %v721_v33 }
 0x355   : > { %v1266_v34 = vpop.eup %1265 }
 0x356   : > { %v660_v35 = vpop.xlane.xlu0 %659  ;;  %v864_v36 = vsel %vm625_vm8, %v1266_v34, 0.0 }
 0x357   : > { %1267 = vrcp.f32 %v660_v35  ;;  %865 = vadd.xlane.f32.xlu0 %v864_v36 }
 0x35d   : > { %v1268_v37 = vpop.eup %1267 }
 0x35e   : > { %v662_v38 = vmul.f32 %v1268_v37, %v1260_v19 }
 0x360   : > { %1119 = vmatmul.msk.f32.vlgmr.msrb.gmra.mxu3 %vm625_vm8, %v662_v38 }
 0x361   : > { %798 = vrot.lane.b32.xlu1 %v1782_v0, %s1563_s19 }
 0x367   : > { %727 = vrot.lane.b32.xlu2 %v1782_v0, %s1562_s16 }
 0x36b   : > { %869 = vrot.lane.b32.xlu0 %v1782_v0, %s1564_s14 }
 0x3bb   : > { %v795_v40 = vpop.xlane.xlu1 %794 }
 0x3c2   : > { %v723_v39 = vpop.xlane.xlu2 %722 }
 0x3c3   : > { %1269 = vrcp.f32 %v723_v39 }
 0x3c4   : > { %1271 = vrcp.f32 %v795_v40 }
 0x3c9   : > { %v1270_v41 = vpop.eup %1269 }
 0x3ca   : > { %v728_v42 = vpop.permute.xlu2 %727  ;;  %v725_v43 = vmul.f32 %v1270_v41, %v1264_v31  ;;  %v1272_v44 = vpop.eup %1271 }
 0x3cb   : > { %748 = vmatpush.msrb.mxu1 %v728_v42  ;;  %v866_v45 = vpop.xlane.xlu0 %865  ;;  %v797_v46 = vmul.f32 %v1272_v44, %v1262_v27 }
 0x3cc   : > { %1122 = vmatmul.msk.f32.vlgmr.msrb.gmra.mxu1 %vm625_vm8, %v725_v43  ;;  %1273 = vrcp.f32 %v866_v45 }
 0x3d2   : > { %v1274_v48 = vpop.eup %1273 }
 0x3d3   : > { %v799_v47 = vpop.permute.xlu1 %798  ;;  %v868_v49 = vmul.f32 %v1274_v48, %v1266_v34 }
 0x3d4   : > { %819 = vmatpush.msra.mxu3 %v799_v47 }
 0x3d5   : > { %1125 = vmatmul.msk.f32.vlgmr.msra.gmra.mxu3 %vm625_vm8, %v797_v46 }
 0x3dd   : > { %v870_v50 = vpop.permute.xlu0 %869 }
 0x3de   : > { %890 = vmatpush.msra.mxu1 %v870_v50 }
 0x3df   : > { %1128 = vmatmul.msk.f32.vlgmr.msra.gmra.mxu1 %vm625_vm8, %v868_v49 }
 0x3e3   : > { %v683_v51 = vpop.f32.mrf.mxu3 }
 0x3e4   : > { %686 = vst.msk [vmem:[#allocation4] sm:$0xff] %vm625_vm8, %v683_v51 }
 0x449   : > { %v750_v52 = vpop.f32.mrf.mxu1 }
 0x44a   : > { %754 = vrot.lane.b32.xlu2 %v750_v52, %s1565_s17 }
 0x458   : > { %v821_v53 = vpop.f32.mrf.mxu3 }
 0x459   : > { %825 = vrot.lane.b32.xlu0 %v821_v53, %s1566_s20 }
 0x45c   : > { %v892_v54 = vpop.f32.mrf.mxu1 }
 0x45d   : > { %896 = vrot.lane.b32.xlu1 %v892_v54, %s1567_s26 }
 0x4a4   : > { %v755_v55 = vpop.permute.xlu2 %754 }
 0x4a5   : > { %758 = vst.msk [vmem:[#allocation4] sm:$0xff] %vm757_vm9, %v755_v55 }
 0x4cb   : > { %v826_v60 = vpop.permute.xlu0 %825 }
 0x4cc   : > { %829 = vst.msk [vmem:[#allocation4] sm:$0xff] %vm828_vm10, %v826_v60 }
 0x4cf   : > { %v897_v61 = vpop.permute.xlu1 %896 }
 0x4d0   : > { %900 = vst.msk [vmem:[#allocation4] sm:$0xff] %vm899_vm11, %v897_v61 }
 0x4d7   : > { %v901_v62 = vld [vmem:[#allocation4] sm:$0xff] }
 0x4d8   : > { %1129 = vmatmul.msk.f32.vlgmr.msra.gmra.mxu2 %vm466_vm0, %v901_v62 }
 0x55b   : > { %v926_v63 = vpop.f32.mrf.mxu2 }
 0x55c   : > { %929 = vst.msk [vmem:[%s456_s4] sm:$0xff] %vm466_vm0, %v926_v63 }
 0x55d   : > { %1482 = shalt.err (!%p1479_p13)
}
 0x55e   : > { %1154 = dma.vmem_to_hbm [thread:$0]  (%p1705_p2), %s946_s6, 128, %s948_s7, %s931_s29  }
 0x55f PF: > { %s959_s16 = sand.u32 1, %s1533_s27   ;;  %p1177_p0 = pnand %p1101_p6, %p1712_p5 }
 0x560   : > { %s960_s19 = scalar_lea.sflag [#allocation7], %s959_s16 }
 0x561   : > { %p1178_p4 = pneg %p1177_p0 }
 0x563   : > { %1528 = dma.done.wait (%p1178_p4), %s960_s19, 128  }
 0x564   : > { %1530 = vsyncadd (%p1178_p4), %s960_s19, 4294967168  ;;  %s29_s10 = sadd.s32 1, %s1553_s10   ;;  %s1890_s14 = sld [smem:[#allocation23_spill]] }
 0x565   : > { %p26_p7 = scmp.ge.s32.totalorder %s29_s10, 4   ;;  %s1891_s29 = sld [smem:[#allocation26_spill]] }
 0x566   : > { %s1892_s30 = sld [smem:[#allocation24_spill]]  ;;  %s1894_s27 = smov %s1537_s28 }
 0x567   : > { %s1893_s9 = sld [smem:[#allocation25_spill]]  ;;  %28 = sbr.rel (!%p26_p7) target bundleno = 15 (0xf), region = 130 }
 0x56a   : > { %s1895_s28 = smov %s1890_s14 }
 0x56c   :  { %966 = vsyncpa [#allocation6], 1 }
 0x56d   :  { %968 = vsyncpa [#allocation6 + $0x1], 1 }
 0x56e   :  { %969 = vsyncpa [#allocation9], 1 }
 0x56f   :  { %971 = vsyncpa [#allocation9 + $0x1], 1 }
 0x570   :  { %972 = vsyncpa [#allocation12], 1 }
 0x571   :  { %973 = vsyncpa [#allocation15], 1 }
 0x572   :  { %974 = vsyncpa [#allocation7], 1 }
 0x573   :  { %976 = vsyncpa [#allocation7 + $0x1], 1 }

</bundles_post_ra>
